<compile_context>
chip_gen: v7x
topology: tpu7x:2x2x1
jax: 0.10.0
libtpu: 0.0.40
codegen_flags: <defaults>
</compile_context>

<pallas_src>
import functools

import jax
import jax.numpy as jnp
from jax.experimental import pallas as pl
from jax.experimental.pallas import tpu as pltpu


# ----------------------------------------------------------------------------
# Fused Pallas kernel: embedding gather + all LSTM layers (bidi) + last-step FC
# ----------------------------------------------------------------------------
def make_textrnn_kernel(num_layers, T, B, H, V_pad):
  """Builds the fused kernel for static (num_layers, T, B, H, V_pad).

  Kernel ref layout (all whole-array VMEM blocks, single program):
    ids_ref  : (T*B, 1) int32   flattened time-major token ids
    emb_ref  : (V_pad, E)       embedding table (vocab padded to mult. of 8)
    per layer l (3 refs each)   w_ih (D_in, 8H) = [W_ih_f^T | W_ih_b^T]
                                w_hh (H,    8H) = [W_hh_f^T | W_hh_b^T]
                                b    (1,    8H) = [b_f | b_b]   (b_ih + b_hh)
    fc_w (2H, C), fc_b (1, C)
    o_ref (B, C)                output logits
    x_scr (T*B, 2H)             VMEM scratch: inter-layer activations
  """
  TB = T * B

  def kernel(ids_ref, emb_ref, *args):
    layer_refs = args[:3 * num_layers]
    fc_w_ref, fc_b_ref, o_ref, x_scr = args[3 * num_layers:]

    # ---- Fused embedding gather: one-hot @ table on the MXU (no XLA glue).
    ids = ids_ref[...]                                              # (TB, 1) int32
    vocab_iota = jax.lax.broadcasted_iota(jnp.int32, (TB, V_pad), 1)
    one_hot = (vocab_iota == ids).astype(jnp.float32)               # (TB, V_pad)
    x = jnp.dot(one_hot, emb_ref[...],
                preferred_element_type=jnp.float32)                 # (TB, E)

    # ---- Masks hoisted out of all loops (broadcast_in_dim is not CSE'd).
    row_iota = jax.lax.broadcasted_iota(jnp.int32, (2 * B, 4 * H), 0)
    is_fw_row = row_iota < B                                        # rows [:B] = fw
    lane_iota = jax.lax.broadcasted_iota(jnp.int32, (2 * B, 4 * H), 1)
    is_g_lane = (lane_iota >= 2 * H) & (lane_iota < 3 * H)          # g-gate columns

    last_fw = None
    last_bw = None
    for l in range(num_layers):
      w_ih = layer_refs[3 * l][...]                                 # (D_in, 8H)
      w_hh = layer_refs[3 * l + 1][...]                             # (H, 8H)
      b = layer_refs[3 * l + 2][...]                                # (1, 8H)

      if l > 0:
        x = x_scr[...]                                              # (TB, 2H)

      # Hoisted input projection for both directions (off the serial path).
      gx = jnp.dot(x, w_ih, preferred_element_type=jnp.float32) + b  # (TB, 8H)

      # Pre-pack per-step operands: rows [:B] = fw @ time t, rows [B:] = bw @
      # time T-1-t.  Built once per layer, not on the recurrence chain.
      gx_step = []
      for t in range(T):
        tb = T - 1 - t
        gx_step.append(jnp.concatenate(
            [gx[t * B:(t + 1) * B, :4 * H],
             gx[tb * B:(tb + 1) * B, 4 * H:]], axis=0))             # (2B, 4H)

      h = jnp.zeros((2 * B, H), jnp.float32)
      c = jnp.zeros((2 * B, H), jnp.float32)
      is_last_layer = (l == num_layers - 1)

      for t in range(T):                                            # static unroll
        tb = T - 1 - t
        if t == 0:
          gates = gx_step[0]                                        # h == 0
        else:
          g_hh = jnp.dot(h, w_hh, preferred_element_type=jnp.float32)  # (2B, 8H)
          # :4H / 4H: column views are 128-lane aligned (free); fw/bw blend is
          # a single sublane-mask select instead of slices + axis-0 concat.
          gates = (jnp.where(is_fw_row, g_hh[:, :4 * H], g_hh[:, 4 * H:])
                   + gx_step[t])                                    # (2B, 4H)

        # Two full-tile EUP passes + one lane-mask select (PyTorch order i,f,g,o:
        # tanh on the g columns, sigmoid elsewhere).
        sg = jax.nn.sigmoid(gates)
        tg = jnp.tanh(gates)
        act = jnp.where(is_g_lane, tg, sg)                          # (2B, 4H)

        i_g = act[:, 0 * H:1 * H]
        f_g = act[:, 1 * H:2 * H]
        g_g = act[:, 2 * H:3 * H]
        o_g = act[:, 3 * H:4 * H]
        c = f_g * c + i_g * g_g
        h = o_g * jnp.tanh(c)

        if is_last_layer:
          if t == T - 1:
            last_fw = h[:B]                                         # fw @ time T-1
          if t == 0:
            last_bw = h[B:]                                         # bw @ time T-1
        else:
          # Next-layer input, time-major (TB, 2H), sunk into VMEM scratch at
          # static offsets (bounds live ranges, removes the 2T-way concat).
          x_scr[t * B:(t + 1) * B, :H] = h[:B]
          x_scr[tb * B:(tb + 1) * B, H:] = h[B:]

    # out[:, -1, :] == [fw hidden at t=T-1 | bw hidden at position T-1] -> FC.
    last = jnp.concatenate([last_fw, last_bw], axis=1)              # (B, 2H)
    o_ref[...] = (jnp.dot(last, fc_w_ref[...],
                          preferred_element_type=jnp.float32) + fc_b_ref[...])

  return kernel


# ----------------------------------------------------------------------------
# Forward wrapper
# ----------------------------------------------------------------------------
@functools.partial(jax.jit, static_argnames=("num_layers",))
def textrnn_forward(tokens, params, num_layers):
  """tokens: (B, T) int32 -> logits (B, num_class)."""
  B, T = tokens.shape
  emb = params["embedding"]                          # (V, E)
  V, _ = emb.shape
  V_pad = ((V + 7) // 8) * 8
  if V_pad != V:                                     # sublane-align the table
    emb = jnp.pad(emb, ((0, V_pad - V), (0, 0)))

  # Flattened time-major ids (row i = time i // B, batch i % B); the gather
  # itself happens inside the kernel.
  ids = jnp.transpose(tokens).reshape(T * B, 1).astype(jnp.int32)

  H = params["lstm"][0]["w_hh"].shape[0]
  C = params["fc_w"].shape[1]

  flat_weights = []
  for l in range(num_layers):
    lp = params["lstm"][l]
    flat_weights += [lp["w_ih"], lp["w_hh"], lp["b"]]

  return pl.pallas_call(
      make_textrnn_kernel(num_layers, T, B, H, V_pad),
      out_shape=jax.ShapeDtypeStruct((B, C), jnp.float32),
      scratch_shapes=[pltpu.VMEM((T * B, 2 * H), jnp.float32)],
  )(ids, emb, *flat_weights, params["fc_w"], params["fc_b"])


# ----------------------------------------------------------------------------
# Pure-JAX reference (same parameter convention) for a correctness check
# ----------------------------------------------------------------------------
def reference_forward(tokens, params, num_layers):
  emb = params["embedding"]
  x = jnp.take(emb, tokens, axis=0)                  # (B, T, E)
  B = x.shape[0]
  for l in range(num_layers):
    lp = params["lstm"][l]
    H = lp["w_hh"].shape[0]

    def run(xs, w_ih, w_hh, b):
      def step(carry, x_t):
        h, c = carry
        g = x_t @ w_ih + h @ w_hh + b
        i = jax.nn.sigmoid(g[:, :H])
        f = jax.nn.sigmoid(g[:, H:2 * H])
        gg = jnp.tanh(g[:, 2 * H:3 * H])
        o = jax.nn.sigmoid(g[:, 3 * H:])
        c = f * c + i * gg
        h = o * jnp.tanh(c)
        return (h, c), h

      init = (jnp.zeros((B, H), jnp.float32), jnp.zeros((B, H), jnp.float32))
      _, hs = jax.lax.scan(step, init, xs)
      return hs                                      # (T, B, H)

    xs = jnp.transpose(x, (1, 0, 2))                 # (T, B, D_in)
    fw = run(xs, lp["w_ih"][:, :4 * H], lp["w_hh"][:, :4 * H], lp["b"][:, :4 * H])
    bw = run(xs[::-1], lp["w_ih"][:, 4 * H:], lp["w_hh"][:, 4 * H:],
             lp["b"][:, 4 * H:])[::-1]
    x = jnp.transpose(jnp.concatenate([fw, bw], axis=-1), (1, 0, 2))
  return x[:, -1, :] @ params["fc_w"] + params["fc_b"]


# ----------------------------------------------------------------------------
# Deterministic parameter construction
# ----------------------------------------------------------------------------
def make_params(key, vocab_size, embed, hidden, num_layers, num_class):
  keys = iter(jax.random.split(key, 3 + 8 * num_layers))
  scale = 0.1

  emb = scale * jax.random.normal(next(keys), (vocab_size, embed), jnp.float32)
  emb = emb.at[0].set(0.0)                           # padding_idx=0

  lstm_params = []
  d_in = embed
  for _ in range(num_layers):
    w_ih_parts, w_hh_parts, b_parts = [], [], []
    for _direction in range(2):                      # forward, backward
      w_ih_parts.append(
          scale * jax.random.normal(next(keys), (d_in, 4 * hidden), jnp.float32))
      w_hh_parts.append(
          scale * jax.random.normal(next(keys), (hidden, 4 * hidden), jnp.float32))
      b_ih = scale * jax.random.normal(next(keys), (1, 4 * hidden), jnp.float32)
      b_hh = scale * jax.random.normal(next(keys), (1, 4 * hidden), jnp.float32)
      b_parts.append(b_ih + b_hh)
    lstm_params.append({
        "w_ih": jnp.concatenate(w_ih_parts, axis=1),   # (d_in, 8H)
        "w_hh": jnp.concatenate(w_hh_parts, axis=1),   # (H, 8H)
        "b": jnp.concatenate(b_parts, axis=1),         # (1, 8H)
    })
    d_in = 2 * hidden

  fc_w = scale * jax.random.normal(next(keys), (2 * hidden, num_class), jnp.float32)
  fc_b = scale * jax.random.normal(next(keys), (1, num_class), jnp.float32)

  return {"embedding": emb, "lstm": lstm_params, "fc_w": fc_w, "fc_b": fc_b}


# ----------------------------------------------------------------------------
# Main
# ----------------------------------------------------------------------------
if __name__ == "__main__":
  VOCAB = 50
  EMBED = 32
  HIDDEN = 32
  NUM_LAYERS = 2
  NUM_CLASS = 5
  B, T = 2, 8

  root = jax.random.PRNGKey(0)
  k_params, k_tokens = jax.random.split(root)

  params = make_params(k_params, VOCAB, EMBED, HIDDEN, NUM_LAYERS, NUM_CLASS)
  tokens = jax.random.randint(k_tokens, (B, T), 0, VOCAB, dtype=jnp.int32)

  out = textrnn_forward(tokens, params, NUM_LAYERS)
  out = jax.block_until_ready(out)

  assert out.shape == (B, NUM_CLASS), out.shape
  assert out.dtype == jnp.float32, out.dtype

  ref = reference_forward(tokens, params, NUM_LAYERS)
  max_err = float(jnp.max(jnp.abs(out - ref)))
  assert max_err < 5e-3, f"kernel/reference mismatch: max abs err = {max_err}"

  print("KERNEL_OK")
</pallas_src>

<mosaic_0001>
module attributes {stable_mosaic.version = 11 : i64} {
  func.func @kernel(%arg0: memref<16x1xi32, #tpu.memory_space<vmem>>, %arg1: memref<56x32xf32, #tpu.memory_space<vmem>>, %arg2: memref<32x256xf32, #tpu.memory_space<vmem>>, %arg3: memref<32x256xf32, #tpu.memory_space<vmem>>, %arg4: memref<1x256xf32, #tpu.memory_space<vmem>>, %arg5: memref<64x256xf32, #tpu.memory_space<vmem>>, %arg6: memref<32x256xf32, #tpu.memory_space<vmem>>, %arg7: memref<1x256xf32, #tpu.memory_space<vmem>>, %arg8: memref<64x5xf32, #tpu.memory_space<vmem>>, %arg9: memref<1x5xf32, #tpu.memory_space<vmem>>, %arg10: memref<2x5xf32, #tpu.memory_space<vmem>>, %arg11: memref<16x64xf32, #tpu.memory_space<vmem>>) attributes {dimension_semantics = [], scalar_prefetch = 0 : i64, scratch_operands = 1 : i64, tpu.core_type = #tpu.core_type<tc>} {
    %c0 = arith.constant 0 : index
    %c0_0 = arith.constant 0 : index
    %0 = vector.load %arg0[%c0, %c0_0] : memref<16x1xi32, #tpu.memory_space<vmem>>, vector<16x1xi32>
    %1 = tpu.iota {dimensions = array<i32: 1>} : vector<16x56xi32>
    %2 = vector.broadcast %0 : vector<16x1xi32> to vector<16x56xi32>
    %3 = arith.cmpi eq, %1, %2 : vector<16x56xi32>
    %4 = arith.extui %3 : vector<16x56xi1> to vector<16x56xi32>
    %5 = arith.sitofp %4 : vector<16x56xi32> to vector<16x56xf32>
    %c0_1 = arith.constant 0 : index
    %c0_2 = arith.constant 0 : index
    %6 = vector.load %arg1[%c0_1, %c0_2] : memref<56x32xf32, #tpu.memory_space<vmem>>, vector<56x32xf32>
    %cst = arith.constant dense<0.000000e+00> : vector<16x32xf32>
    %7 = tpu.matmul %5, %6, %cst {dimension_numbers = #tpu.dot_dimension_numbers<[1], [0], [0], [1], [0, 0, 1, 1], [], []>} : vector<16x56xf32>, vector<56x32xf32>, vector<16x32xf32> -> vector<16x32xf32>
    %8 = tpu.iota {dimensions = array<i32: 0>} : vector<4x128xi32>
    %c2_i32 = arith.constant 2 : i32
    %9 = vector.broadcast %c2_i32 : i32 to vector<4x128xi32>
    %10 = arith.cmpi slt, %8, %9 : vector<4x128xi32>
    %11 = tpu.iota {dimensions = array<i32: 1>} : vector<4x128xi32>
    %c64_i32 = arith.constant 64 : i32
    %12 = vector.broadcast %c64_i32 : i32 to vector<4x128xi32>
    %13 = arith.cmpi sge, %11, %12 : vector<4x128xi32>
    %c96_i32 = arith.constant 96 : i32
    %14 = vector.broadcast %c96_i32 : i32 to vector<4x128xi32>
    %15 = arith.cmpi slt, %11, %14 : vector<4x128xi32>
    %16 = arith.andi %13, %15 : vector<4x128xi1>
    %c0_3 = arith.constant 0 : index
    %c0_4 = arith.constant 0 : index
    %17 = vector.load %arg2[%c0_3, %c0_4] : memref<32x256xf32, #tpu.memory_space<vmem>>, vector<32x256xf32>
    %c0_5 = arith.constant 0 : index
    %c0_6 = arith.constant 0 : index
    %18 = vector.load %arg3[%c0_5, %c0_6] : memref<32x256xf32, #tpu.memory_space<vmem>>, vector<32x256xf32>
    %c0_7 = arith.constant 0 : index
    %c0_8 = arith.constant 0 : index
    %19 = vector.load %arg4[%c0_7, %c0_8] : memref<1x256xf32, #tpu.memory_space<vmem>>, vector<1x256xf32>
    %cst_9 = arith.constant dense<0.000000e+00> : vector<16x256xf32>
    %20 = tpu.matmul %7, %17, %cst_9 {dimension_numbers = #tpu.dot_dimension_numbers<[1], [0], [0], [1], [0, 0, 1, 1], [], []>} : vector<16x32xf32>, vector<32x256xf32>, vector<16x256xf32> -> vector<16x256xf32>
    %21 = vector.broadcast %19 : vector<1x256xf32> to vector<16x256xf32>
    %22 = arith.addf %20, %21 : vector<16x256xf32>
    %23 = vector.extract_strided_slice %22 {offsets = [0, 0], sizes = [2, 128], strides = [1, 1]} : vector<16x256xf32> to vector<2x128xf32>
    %24 = vector.extract_strided_slice %22 {offsets = [14, 128], sizes = [2, 128], strides = [1, 1]} : vector<16x256xf32> to vector<2x128xf32>
    %25 = tpu.concatenate %23, %24 in 0 : vector<2x128xf32>, vector<2x128xf32> -> vector<4x128xf32>
    %26 = vector.extract_strided_slice %22 {offsets = [2, 0], sizes = [2, 128], strides = [1, 1]} : vector<16x256xf32> to vector<2x128xf32>
    %27 = vector.extract_strided_slice %22 {offsets = [12, 128], sizes = [2, 128], strides = [1, 1]} : vector<16x256xf32> to vector<2x128xf32>
    %28 = tpu.concatenate %26, %27 in 0 : vector<2x128xf32>, vector<2x128xf32> -> vector<4x128xf32>
    %29 = vector.extract_strided_slice %22 {offsets = [4, 0], sizes = [2, 128], strides = [1, 1]} : vector<16x256xf32> to vector<2x128xf32>
    %30 = vector.extract_strided_slice %22 {offsets = [10, 128], sizes = [2, 128], strides = [1, 1]} : vector<16x256xf32> to vector<2x128xf32>
    %31 = tpu.concatenate %29, %30 in 0 : vector<2x128xf32>, vector<2x128xf32> -> vector<4x128xf32>
    %32 = vector.extract_strided_slice %22 {offsets = [6, 0], sizes = [2, 128], strides = [1, 1]} : vector<16x256xf32> to vector<2x128xf32>
    %33 = vector.extract_strided_slice %22 {offsets = [8, 128], sizes = [2, 128], strides = [1, 1]} : vector<16x256xf32> to vector<2x128xf32>
    %34 = tpu.concatenate %32, %33 in 0 : vector<2x128xf32>, vector<2x128xf32> -> vector<4x128xf32>
    %35 = vector.extract_strided_slice %22 {offsets = [8, 0], sizes = [2, 128], strides = [1, 1]} : vector<16x256xf32> to vector<2x128xf32>
    %36 = vector.extract_strided_slice %22 {offsets = [6, 128], sizes = [2, 128], strides = [1, 1]} : vector<16x256xf32> to vector<2x128xf32>
    %37 = tpu.concatenate %35, %36 in 0 : vector<2x128xf32>, vector<2x128xf32> -> vector<4x128xf32>
    %38 = vector.extract_strided_slice %22 {offsets = [10, 0], sizes = [2, 128], strides = [1, 1]} : vector<16x256xf32> to vector<2x128xf32>
    %39 = vector.extract_strided_slice %22 {offsets = [4, 128], sizes = [2, 128], strides = [1, 1]} : vector<16x256xf32> to vector<2x128xf32>
    %40 = tpu.concatenate %38, %39 in 0 : vector<2x128xf32>, vector<2x128xf32> -> vector<4x128xf32>
    %41 = vector.extract_strided_slice %22 {offsets = [12, 0], sizes = [2, 128], strides = [1, 1]} : vector<16x256xf32> to vector<2x128xf32>
    %42 = vector.extract_strided_slice %22 {offsets = [2, 128], sizes = [2, 128], strides = [1, 1]} : vector<16x256xf32> to vector<2x128xf32>
    %43 = tpu.concatenate %41, %42 in 0 : vector<2x128xf32>, vector<2x128xf32> -> vector<4x128xf32>
    %44 = vector.extract_strided_slice %22 {offsets = [14, 0], sizes = [2, 128], strides = [1, 1]} : vector<16x256xf32> to vector<2x128xf32>
    %45 = vector.extract_strided_slice %22 {offsets = [0, 128], sizes = [2, 128], strides = [1, 1]} : vector<16x256xf32> to vector<2x128xf32>
    %46 = tpu.concatenate %44, %45 in 0 : vector<2x128xf32>, vector<2x128xf32> -> vector<4x128xf32>
    %cst_10 = arith.constant 0.000000e+00 : f32
    %47 = vector.broadcast %cst_10 : f32 to vector<4x32xf32>
    %48 = arith.negf %25 : vector<4x128xf32>
    %49 = math.exp %48 : vector<4x128xf32>
    %cst_11 = arith.constant 1.000000e+00 : f32
    %50 = vector.broadcast %cst_11 : f32 to vector<4x128xf32>
    %51 = arith.addf %50, %49 : vector<4x128xf32>
    %52 = arith.divf %50, %51 : vector<4x128xf32>
    %53 = math.tanh %25 : vector<4x128xf32>
    %54 = arith.select %16, %53, %52 : vector<4x128xi1>, vector<4x128xf32>
    %55 = vector.extract_strided_slice %54 {offsets = [0, 0], sizes = [4, 32], strides = [1, 1]} : vector<4x128xf32> to vector<4x32xf32>
    %56 = vector.extract_strided_slice %54 {offsets = [0, 32], sizes = [4, 32], strides = [1, 1]} : vector<4x128xf32> to vector<4x32xf32>
    %57 = vector.extract_strided_slice %54 {offsets = [0, 64], sizes = [4, 32], strides = [1, 1]} : vector<4x128xf32> to vector<4x32xf32>
    %58 = vector.extract_strided_slice %54 {offsets = [0, 96], sizes = [4, 32], strides = [1, 1]} : vector<4x128xf32> to vector<4x32xf32>
    %59 = arith.mulf %56, %47 : vector<4x32xf32>
    %60 = arith.mulf %55, %57 : vector<4x32xf32>
    %61 = arith.addf %59, %60 : vector<4x32xf32>
    %62 = math.tanh %61 : vector<4x32xf32>
    %63 = arith.mulf %58, %62 : vector<4x32xf32>
    %64 = vector.extract_strided_slice %63 {offsets = [0, 0], sizes = [2, 32], strides = [1, 1]} : vector<4x32xf32> to vector<2x32xf32>
    %c0_12 = arith.constant 0 : index
    %c0_13 = arith.constant 0 : index
    %65 = vector.load %arg11[%c0_12, %c0_13] : memref<16x64xf32, #tpu.memory_space<vmem>>, vector<2x32xf32>
    tpu.vector_store %arg11[%c0_12, %c0_13], %64 {strides = array<i32>} : memref<16x64xf32, #tpu.memory_space<vmem>>, vector<2x32xf32>,
    %66 = vector.extract_strided_slice %63 {offsets = [2, 0], sizes = [2, 32], strides = [1, 1]} : vector<4x32xf32> to vector<2x32xf32>
    %c14 = arith.constant 14 : index
    %c32 = arith.constant 32 : index
    %67 = vector.load %arg11[%c14, %c32] : memref<16x64xf32, #tpu.memory_space<vmem>>, vector<2x32xf32>
    tpu.vector_store %arg11[%c14, %c32], %66 {strides = array<i32>} : memref<16x64xf32, #tpu.memory_space<vmem>>, vector<2x32xf32>,
    %cst_14 = arith.constant dense<0.000000e+00> : vector<4x256xf32>
    %68 = tpu.matmul %63, %18, %cst_14 {dimension_numbers = #tpu.dot_dimension_numbers<[1], [0], [0], [1], [0, 0, 1, 1], [], []>} : vector<4x32xf32>, vector<32x256xf32>, vector<4x256xf32> -> vector<4x256xf32>
    %69 = vector.extract_strided_slice %68 {offsets = [0, 0], sizes = [4, 128], strides = [1, 1]} : vector<4x256xf32> to vector<4x128xf32>
    %70 = vector.extract_strided_slice %68 {offsets = [0, 128], sizes = [4, 128], strides = [1, 1]} : vector<4x256xf32> to vector<4x128xf32>
    %71 = arith.select %10, %69, %70 : vector<4x128xi1>, vector<4x128xf32>
    %72 = arith.addf %71, %28 : vector<4x128xf32>
    %73 = arith.negf %72 : vector<4x128xf32>
    %74 = math.exp %73 : vector<4x128xf32>
    %cst_15 = arith.constant 1.000000e+00 : f32
    %75 = vector.broadcast %cst_15 : f32 to vector<4x128xf32>
    %76 = arith.addf %75, %74 : vector<4x128xf32>
    %77 = arith.divf %75, %76 : vector<4x128xf32>
    %78 = math.tanh %72 : vector<4x128xf32>
    %79 = arith.select %16, %78, %77 : vector<4x128xi1>, vector<4x128xf32>
    %80 = vector.extract_strided_slice %79 {offsets = [0, 0], sizes = [4, 32], strides = [1, 1]} : vector<4x128xf32> to vector<4x32xf32>
    %81 = vector.extract_strided_slice %79 {offsets = [0, 32], sizes = [4, 32], strides = [1, 1]} : vector<4x128xf32> to vector<4x32xf32>
    %82 = vector.extract_strided_slice %79 {offsets = [0, 64], sizes = [4, 32], strides = [1, 1]} : vector<4x128xf32> to vector<4x32xf32>
    %83 = vector.extract_strided_slice %79 {offsets = [0, 96], sizes = [4, 32], strides = [1, 1]} : vector<4x128xf32> to vector<4x32xf32>
    %84 = arith.mulf %81, %61 : vector<4x32xf32>
    %85 = arith.mulf %80, %82 : vector<4x32xf32>
    %86 = arith.addf %84, %85 : vector<4x32xf32>
    %87 = math.tanh %86 : vector<4x32xf32>
    %88 = arith.mulf %83, %87 : vector<4x32xf32>
    %89 = vector.extract_strided_slice %88 {offsets = [0, 0], sizes = [2, 32], strides = [1, 1]} : vector<4x32xf32> to vector<2x32xf32>
    %c2 = arith.constant 2 : index
    %c0_16 = arith.constant 0 : index
    %90 = vector.load %arg11[%c2, %c0_16] : memref<16x64xf32, #tpu.memory_space<vmem>>, vector<2x32xf32>
    tpu.vector_store %arg11[%c2, %c0_16], %89 {strides = array<i32>} : memref<16x64xf32, #tpu.memory_space<vmem>>, vector<2x32xf32>,
    %91 = vector.extract_strided_slice %88 {offsets = [2, 0], sizes = [2, 32], strides = [1, 1]} : vector<4x32xf32> to vector<2x32xf32>
    %c12 = arith.constant 12 : index
    %c32_17 = arith.constant 32 : index
    %92 = vector.load %arg11[%c12, %c32_17] : memref<16x64xf32, #tpu.memory_space<vmem>>, vector<2x32xf32>
    tpu.vector_store %arg11[%c12, %c32_17], %91 {strides = array<i32>} : memref<16x64xf32, #tpu.memory_space<vmem>>, vector<2x32xf32>,
    %cst_18 = arith.constant dense<0.000000e+00> : vector<4x256xf32>
    %93 = tpu.matmul %88, %18, %cst_18 {dimension_numbers = #tpu.dot_dimension_numbers<[1], [0], [0], [1], [0, 0, 1, 1], [], []>} : vector<4x32xf32>, vector<32x256xf32>, vector<4x256xf32> -> vector<4x256xf32>
    %94 = vector.extract_strided_slice %93 {offsets = [0, 0], sizes = [4, 128], strides = [1, 1]} : vector<4x256xf32> to vector<4x128xf32>
    %95 = vector.extract_strided_slice %93 {offsets = [0, 128], sizes = [4, 128], strides = [1, 1]} : vector<4x256xf32> to vector<4x128xf32>
    %96 = arith.select %10, %94, %95 : vector<4x128xi1>, vector<4x128xf32>
    %97 = arith.addf %96, %31 : vector<4x128xf32>
    %98 = arith.negf %97 : vector<4x128xf32>
    %99 = math.exp %98 : vector<4x128xf32>
    %cst_19 = arith.constant 1.000000e+00 : f32
    %100 = vector.broadcast %cst_19 : f32 to vector<4x128xf32>
    %101 = arith.addf %100, %99 : vector<4x128xf32>
    %102 = arith.divf %100, %101 : vector<4x128xf32>
    %103 = math.tanh %97 : vector<4x128xf32>
    %104 = arith.select %16, %103, %102 : vector<4x128xi1>, vector<4x128xf32>
    %105 = vector.extract_strided_slice %104 {offsets = [0, 0], sizes = [4, 32], strides = [1, 1]} : vector<4x128xf32> to vector<4x32xf32>
    %106 = vector.extract_strided_slice %104 {offsets = [0, 32], sizes = [4, 32], strides = [1, 1]} : vector<4x128xf32> to vector<4x32xf32>
    %107 = vector.extract_strided_slice %104 {offsets = [0, 64], sizes = [4, 32], strides = [1, 1]} : vector<4x128xf32> to vector<4x32xf32>
    %108 = vector.extract_strided_slice %104 {offsets = [0, 96], sizes = [4, 32], strides = [1, 1]} : vector<4x128xf32> to vector<4x32xf32>
    %109 = arith.mulf %106, %86 : vector<4x32xf32>
    %110 = arith.mulf %105, %107 : vector<4x32xf32>
    %111 = arith.addf %109, %110 : vector<4x32xf32>
    %112 = math.tanh %111 : vector<4x32xf32>
    %113 = arith.mulf %108, %112 : vector<4x32xf32>
    %114 = vector.extract_strided_slice %113 {offsets = [0, 0], sizes = [2, 32], strides = [1, 1]} : vector<4x32xf32> to vector<2x32xf32>
    %c4 = arith.constant 4 : index
    %c0_20 = arith.constant 0 : index
    %115 = vector.load %arg11[%c4, %c0_20] : memref<16x64xf32, #tpu.memory_space<vmem>>, vector<2x32xf32>
    tpu.vector_store %arg11[%c4, %c0_20], %114 {strides = array<i32>} : memref<16x64xf32, #tpu.memory_space<vmem>>, vector<2x32xf32>,
    %116 = vector.extract_strided_slice %113 {offsets = [2, 0], sizes = [2, 32], strides = [1, 1]} : vector<4x32xf32> to vector<2x32xf32>
    %c10 = arith.constant 10 : index
    %c32_21 = arith.constant 32 : index
    %117 = vector.load %arg11[%c10, %c32_21] : memref<16x64xf32, #tpu.memory_space<vmem>>, vector<2x32xf32>
    tpu.vector_store %arg11[%c10, %c32_21], %116 {strides = array<i32>} : memref<16x64xf32, #tpu.memory_space<vmem>>, vector<2x32xf32>,
    %cst_22 = arith.constant dense<0.000000e+00> : vector<4x256xf32>
    %118 = tpu.matmul %113, %18, %cst_22 {dimension_numbers = #tpu.dot_dimension_numbers<[1], [0], [0], [1], [0, 0, 1, 1], [], []>} : vector<4x32xf32>, vector<32x256xf32>, vector<4x256xf32> -> vector<4x256xf32>
    %119 = vector.extract_strided_slice %118 {offsets = [0, 0], sizes = [4, 128], strides = [1, 1]} : vector<4x256xf32> to vector<4x128xf32>
    %120 = vector.extract_strided_slice %118 {offsets = [0, 128], sizes = [4, 128], strides = [1, 1]} : vector<4x256xf32> to vector<4x128xf32>
    %121 = arith.select %10, %119, %120 : vector<4x128xi1>, vector<4x128xf32>
    %122 = arith.addf %121, %34 : vector<4x128xf32>
    %123 = arith.negf %122 : vector<4x128xf32>
    %124 = math.exp %123 : vector<4x128xf32>
    %cst_23 = arith.constant 1.000000e+00 : f32
    %125 = vector.broadcast %cst_23 : f32 to vector<4x128xf32>
    %126 = arith.addf %125, %124 : vector<4x128xf32>
    %127 = arith.divf %125, %126 : vector<4x128xf32>
    %128 = math.tanh %122 : vector<4x128xf32>
    %129 = arith.select %16, %128, %127 : vector<4x128xi1>, vector<4x128xf32>
    %130 = vector.extract_strided_slice %129 {offsets = [0, 0], sizes = [4, 32], strides = [1, 1]} : vector<4x128xf32> to vector<4x32xf32>
    %131 = vector.extract_strided_slice %129 {offsets = [0, 32], sizes = [4, 32], strides = [1, 1]} : vector<4x128xf32> to vector<4x32xf32>
    %132 = vector.extract_strided_slice %129 {offsets = [0, 64], sizes = [4, 32], strides = [1, 1]} : vector<4x128xf32> to vector<4x32xf32>
    %133 = vector.extract_strided_slice %129 {offsets = [0, 96], sizes = [4, 32], strides = [1, 1]} : vector<4x128xf32> to vector<4x32xf32>
    %134 = arith.mulf %131, %111 : vector<4x32xf32>
    %135 = arith.mulf %130, %132 : vector<4x32xf32>
    %136 = arith.addf %134, %135 : vector<4x32xf32>
    %137 = math.tanh %136 : vector<4x32xf32>
    %138 = arith.mulf %133, %137 : vector<4x32xf32>
    %139 = vector.extract_strided_slice %138 {offsets = [0, 0], sizes = [2, 32], strides = [1, 1]} : vector<4x32xf32> to vector<2x32xf32>
    %c6 = arith.constant 6 : index
    %c0_24 = arith.constant 0 : index
    %140 = vector.load %arg11[%c6, %c0_24] : memref<16x64xf32, #tpu.memory_space<vmem>>, vector<2x32xf32>
    tpu.vector_store %arg11[%c6, %c0_24], %139 {strides = array<i32>} : memref<16x64xf32, #tpu.memory_space<vmem>>, vector<2x32xf32>,
    %141 = vector.extract_strided_slice %138 {offsets = [2, 0], sizes = [2, 32], strides = [1, 1]} : vector<4x32xf32> to vector<2x32xf32>
    %c8 = arith.constant 8 : index
    %c32_25 = arith.constant 32 : index
    %142 = vector.load %arg11[%c8, %c32_25] : memref<16x64xf32, #tpu.memory_space<vmem>>, vector<2x32xf32>
    tpu.vector_store %arg11[%c8, %c32_25], %141 {strides = array<i32>} : memref<16x64xf32, #tpu.memory_space<vmem>>, vector<2x32xf32>,
    %cst_26 = arith.constant dense<0.000000e+00> : vector<4x256xf32>
    %143 = tpu.matmul %138, %18, %cst_26 {dimension_numbers = #tpu.dot_dimension_numbers<[1], [0], [0], [1], [0, 0, 1, 1], [], []>} : vector<4x32xf32>, vector<32x256xf32>, vector<4x256xf32> -> vector<4x256xf32>
    %144 = vector.extract_strided_slice %143 {offsets = [0, 0], sizes = [4, 128], strides = [1, 1]} : vector<4x256xf32> to vector<4x128xf32>
    %145 = vector.extract_strided_slice %143 {offsets = [0, 128], sizes = [4, 128], strides = [1, 1]} : vector<4x256xf32> to vector<4x128xf32>
    %146 = arith.select %10, %144, %145 : vector<4x128xi1>, vector<4x128xf32>
    %147 = arith.addf %146, %37 : vector<4x128xf32>
    %148 = arith.negf %147 : vector<4x128xf32>
    %149 = math.exp %148 : vector<4x128xf32>
    %cst_27 = arith.constant 1.000000e+00 : f32
    %150 = vector.broadcast %cst_27 : f32 to vector<4x128xf32>
    %151 = arith.addf %150, %149 : vector<4x128xf32>
    %152 = arith.divf %150, %151 : vector<4x128xf32>
    %153 = math.tanh %147 : vector<4x128xf32>
    %154 = arith.select %16, %153, %152 : vector<4x128xi1>, vector<4x128xf32>
    %155 = vector.extract_strided_slice %154 {offsets = [0, 0], sizes = [4, 32], strides = [1, 1]} : vector<4x128xf32> to vector<4x32xf32>
    %156 = vector.extract_strided_slice %154 {offsets = [0, 32], sizes = [4, 32], strides = [1, 1]} : vector<4x128xf32> to vector<4x32xf32>
    %157 = vector.extract_strided_slice %154 {offsets = [0, 64], sizes = [4, 32], strides = [1, 1]} : vector<4x128xf32> to vector<4x32xf32>
    %158 = vector.extract_strided_slice %154 {offsets = [0, 96], sizes = [4, 32], strides = [1, 1]} : vector<4x128xf32> to vector<4x32xf32>
    %159 = arith.mulf %156, %136 : vector<4x32xf32>
    %160 = arith.mulf %155, %157 : vector<4x32xf32>
    %161 = arith.addf %159, %160 : vector<4x32xf32>
    %162 = math.tanh %161 : vector<4x32xf32>
    %163 = arith.mulf %158, %162 : vector<4x32xf32>
    %164 = vector.extract_strided_slice %163 {offsets = [0, 0], sizes = [2, 32], strides = [1, 1]} : vector<4x32xf32> to vector<2x32xf32>
    %c8_28 = arith.constant 8 : index
    %c0_29 = arith.constant 0 : index
    %165 = vector.load %arg11[%c8_28, %c0_29] : memref<16x64xf32, #tpu.memory_space<vmem>>, vector<2x32xf32>
    tpu.vector_store %arg11[%c8_28, %c0_29], %164 {strides = array<i32>} : memref<16x64xf32, #tpu.memory_space<vmem>>, vector<2x32xf32>,
    %166 = vector.extract_strided_slice %163 {offsets = [2, 0], sizes = [2, 32], strides = [1, 1]} : vector<4x32xf32> to vector<2x32xf32>
    %c6_30 = arith.constant 6 : index
    %c32_31 = arith.constant 32 : index
    %167 = vector.load %arg11[%c6_30, %c32_31] : memref<16x64xf32, #tpu.memory_space<vmem>>, vector<2x32xf32>
    tpu.vector_store %arg11[%c6_30, %c32_31], %166 {strides = array<i32>} : memref<16x64xf32, #tpu.memory_space<vmem>>, vector<2x32xf32>,
    %cst_32 = arith.constant dense<0.000000e+00> : vector<4x256xf32>
    %168 = tpu.matmul %163, %18, %cst_32 {dimension_numbers = #tpu.dot_dimension_numbers<[1], [0], [0], [1], [0, 0, 1, 1], [], []>} : vector<4x32xf32>, vector<32x256xf32>, vector<4x256xf32> -> vector<4x256xf32>
    %169 = vector.extract_strided_slice %168 {offsets = [0, 0], sizes = [4, 128], strides = [1, 1]} : vector<4x256xf32> to vector<4x128xf32>
    %170 = vector.extract_strided_slice %168 {offsets = [0, 128], sizes = [4, 128], strides = [1, 1]} : vector<4x256xf32> to vector<4x128xf32>
    %171 = arith.select %10, %169, %170 : vector<4x128xi1>, vector<4x128xf32>
    %172 = arith.addf %171, %40 : vector<4x128xf32>
    %173 = arith.negf %172 : vector<4x128xf32>
    %174 = math.exp %173 : vector<4x128xf32>
    %cst_33 = arith.constant 1.000000e+00 : f32
    %175 = vector.broadcast %cst_33 : f32 to vector<4x128xf32>
    %176 = arith.addf %175, %174 : vector<4x128xf32>
    %177 = arith.divf %175, %176 : vector<4x128xf32>
    %178 = math.tanh %172 : vector<4x128xf32>
    %179 = arith.select %16, %178, %177 : vector<4x128xi1>, vector<4x128xf32>
    %180 = vector.extract_strided_slice %179 {offsets = [0, 0], sizes = [4, 32], strides = [1, 1]} : vector<4x128xf32> to vector<4x32xf32>
    %181 = vector.extract_strided_slice %179 {offsets = [0, 32], sizes = [4, 32], strides = [1, 1]} : vector<4x128xf32> to vector<4x32xf32>
    %182 = vector.extract_strided_slice %179 {offsets = [0, 64], sizes = [4, 32], strides = [1, 1]} : vector<4x128xf32> to vector<4x32xf32>
    %183 = vector.extract_strided_slice %179 {offsets = [0, 96], sizes = [4, 32], strides = [1, 1]} : vector<4x128xf32> to vector<4x32xf32>
    %184 = arith.mulf %181, %161 : vector<4x32xf32>
    %185 = arith.mulf %180, %182 : vector<4x32xf32>
    %186 = arith.addf %184, %185 : vector<4x32xf32>
    %187 = math.tanh %186 : vector<4x32xf32>
    %188 = arith.mulf %183, %187 : vector<4x32xf32>
    %189 = vector.extract_strided_slice %188 {offsets = [0, 0], sizes = [2, 32], strides = [1, 1]} : vector<4x32xf32> to vector<2x32xf32>
    %c10_34 = arith.constant 10 : index
    %c0_35 = arith.constant 0 : index
    %190 = vector.load %arg11[%c10_34, %c0_35] : memref<16x64xf32, #tpu.memory_space<vmem>>, vector<2x32xf32>
    tpu.vector_store %arg11[%c10_34, %c0_35], %189 {strides = array<i32>} : memref<16x64xf32, #tpu.memory_space<vmem>>, vector<2x32xf32>,
    %191 = vector.extract_strided_slice %188 {offsets = [2, 0], sizes = [2, 32], strides = [1, 1]} : vector<4x32xf32> to vector<2x32xf32>
    %c4_36 = arith.constant 4 : index
    %c32_37 = arith.constant 32 : index
    %192 = vector.load %arg11[%c4_36, %c32_37] : memref<16x64xf32, #tpu.memory_space<vmem>>, vector<2x32xf32>
    tpu.vector_store %arg11[%c4_36, %c32_37], %191 {strides = array<i32>} : memref<16x64xf32, #tpu.memory_space<vmem>>, vector<2x32xf32>,
    %cst_38 = arith.constant dense<0.000000e+00> : vector<4x256xf32>
    %193 = tpu.matmul %188, %18, %cst_38 {dimension_numbers = #tpu.dot_dimension_numbers<[1], [0], [0], [1], [0, 0, 1, 1], [], []>} : vector<4x32xf32>, vector<32x256xf32>, vector<4x256xf32> -> vector<4x256xf32>
    %194 = vector.extract_strided_slice %193 {offsets = [0, 0], sizes = [4, 128], strides = [1, 1]} : vector<4x256xf32> to vector<4x128xf32>
    %195 = vector.extract_strided_slice %193 {offsets = [0, 128], sizes = [4, 128], strides = [1, 1]} : vector<4x256xf32> to vector<4x128xf32>
    %196 = arith.select %10, %194, %195 : vector<4x128xi1>, vector<4x128xf32>
    %197 = arith.addf %196, %43 : vector<4x128xf32>
    %198 = arith.negf %197 : vector<4x128xf32>
    %199 = math.exp %198 : vector<4x128xf32>
    %cst_39 = arith.constant 1.000000e+00 : f32
    %200 = vector.broadcast %cst_39 : f32 to vector<4x128xf32>
    %201 = arith.addf %200, %199 : vector<4x128xf32>
    %202 = arith.divf %200, %201 : vector<4x128xf32>
    %203 = math.tanh %197 : vector<4x128xf32>
    %204 = arith.select %16, %203, %202 : vector<4x128xi1>, vector<4x128xf32>
    %205 = vector.extract_strided_slice %204 {offsets = [0, 0], sizes = [4, 32], strides = [1, 1]} : vector<4x128xf32> to vector<4x32xf32>
    %206 = vector.extract_strided_slice %204 {offsets = [0, 32], sizes = [4, 32], strides = [1, 1]} : vector<4x128xf32> to vector<4x32xf32>
    %207 = vector.extract_strided_slice %204 {offsets = [0, 64], sizes = [4, 32], strides = [1, 1]} : vector<4x128xf32> to vector<4x32xf32>
    %208 = vector.extract_strided_slice %204 {offsets = [0, 96], sizes = [4, 32], strides = [1, 1]} : vector<4x128xf32> to vector<4x32xf32>
    %209 = arith.mulf %206, %186 : vector<4x32xf32>
    %210 = arith.mulf %205, %207 : vector<4x32xf32>
    %211 = arith.addf %209, %210 : vector<4x32xf32>
    %212 = math.tanh %211 : vector<4x32xf32>
    %213 = arith.mulf %208, %212 : vector<4x32xf32>
    %214 = vector.extract_strided_slice %213 {offsets = [0, 0], sizes = [2, 32], strides = [1, 1]} : vector<4x32xf32> to vector<2x32xf32>
    %c12_40 = arith.constant 12 : index
    %c0_41 = arith.constant 0 : index
    %215 = vector.load %arg11[%c12_40, %c0_41] : memref<16x64xf32, #tpu.memory_space<vmem>>, vector<2x32xf32>
    tpu.vector_store %arg11[%c12_40, %c0_41], %214 {strides = array<i32>} : memref<16x64xf32, #tpu.memory_space<vmem>>, vector<2x32xf32>,
    %216 = vector.extract_strided_slice %213 {offsets = [2, 0], sizes = [2, 32], strides = [1, 1]} : vector<4x32xf32> to vector<2x32xf32>
    %c2_42 = arith.constant 2 : index
    %c32_43 = arith.constant 32 : index
    %217 = vector.load %arg11[%c2_42, %c32_43] : memref<16x64xf32, #tpu.memory_space<vmem>>, vector<2x32xf32>
    tpu.vector_store %arg11[%c2_42, %c32_43], %216 {strides = array<i32>} : memref<16x64xf32, #tpu.memory_space<vmem>>, vector<2x32xf32>,
    %cst_44 = arith.constant dense<0.000000e+00> : vector<4x256xf32>
    %218 = tpu.matmul %213, %18, %cst_44 {dimension_numbers = #tpu.dot_dimension_numbers<[1], [0], [0], [1], [0, 0, 1, 1], [], []>} : vector<4x32xf32>, vector<32x256xf32>, vector<4x256xf32> -> vector<4x256xf32>
    %219 = vector.extract_strided_slice %218 {offsets = [0, 0], sizes = [4, 128], strides = [1, 1]} : vector<4x256xf32> to vector<4x128xf32>
    %220 = vector.extract_strided_slice %218 {offsets = [0, 128], sizes = [4, 128], strides = [1, 1]} : vector<4x256xf32> to vector<4x128xf32>
    %221 = arith.select %10, %219, %220 : vector<4x128xi1>, vector<4x128xf32>
    %222 = arith.addf %221, %46 : vector<4x128xf32>
    %223 = arith.negf %222 : vector<4x128xf32>
    %224 = math.exp %223 : vector<4x128xf32>
    %cst_45 = arith.constant 1.000000e+00 : f32
    %225 = vector.broadcast %cst_45 : f32 to vector<4x128xf32>
    %226 = arith.addf %225, %224 : vector<4x128xf32>
    %227 = arith.divf %225, %226 : vector<4x128xf32>
    %228 = math.tanh %222 : vector<4x128xf32>
    %229 = arith.select %16, %228, %227 : vector<4x128xi1>, vector<4x128xf32>
    %230 = vector.extract_strided_slice %229 {offsets = [0, 0], sizes = [4, 32], strides = [1, 1]} : vector<4x128xf32> to vector<4x32xf32>
    %231 = vector.extract_strided_slice %229 {offsets = [0, 32], sizes = [4, 32], strides = [1, 1]} : vector<4x128xf32> to vector<4x32xf32>
    %232 = vector.extract_strided_slice %229 {offsets = [0, 64], sizes = [4, 32], strides = [1, 1]} : vector<4x128xf32> to vector<4x32xf32>
    %233 = vector.extract_strided_slice %229 {offsets = [0, 96], sizes = [4, 32], strides = [1, 1]} : vector<4x128xf32> to vector<4x32xf32>
    %234 = arith.mulf %231, %211 : vector<4x32xf32>
    %235 = arith.mulf %230, %232 : vector<4x32xf32>
    %236 = arith.addf %234, %235 : vector<4x32xf32>
    %237 = math.tanh %236 : vector<4x32xf32>
    %238 = arith.mulf %233, %237 : vector<4x32xf32>
    %239 = vector.extract_strided_slice %238 {offsets = [0, 0], sizes = [2, 32], strides = [1, 1]} : vector<4x32xf32> to vector<2x32xf32>
    %c14_46 = arith.constant 14 : index
    %c0_47 = arith.constant 0 : index
    %240 = vector.load %arg11[%c14_46, %c0_47] : memref<16x64xf32, #tpu.memory_space<vmem>>, vector<2x32xf32>
    tpu.vector_store %arg11[%c14_46, %c0_47], %239 {strides = array<i32>} : memref<16x64xf32, #tpu.memory_space<vmem>>, vector<2x32xf32>,
    %241 = vector.extract_strided_slice %238 {offsets = [2, 0], sizes = [2, 32], strides = [1, 1]} : vector<4x32xf32> to vector<2x32xf32>
    %c0_48 = arith.constant 0 : index
    %c32_49 = arith.constant 32 : index
    %242 = vector.load %arg11[%c0_48, %c32_49] : memref<16x64xf32, #tpu.memory_space<vmem>>, vector<2x32xf32>
    tpu.vector_store %arg11[%c0_48, %c32_49], %241 {strides = array<i32>} : memref<16x64xf32, #tpu.memory_space<vmem>>, vector<2x32xf32>,
    %c0_50 = arith.constant 0 : index
    %c0_51 = arith.constant 0 : index
    %243 = vector.load %arg5[%c0_50, %c0_51] : memref<64x256xf32, #tpu.memory_space<vmem>>, vector<64x256xf32>
    %c0_52 = arith.constant 0 : index
    %c0_53 = arith.constant 0 : index
    %244 = vector.load %arg6[%c0_52, %c0_53] : memref<32x256xf32, #tpu.memory_space<vmem>>, vector<32x256xf32>
    %c0_54 = arith.constant 0 : index
    %c0_55 = arith.constant 0 : index
    %245 = vector.load %arg7[%c0_54, %c0_55] : memref<1x256xf32, #tpu.memory_space<vmem>>, vector<1x256xf32>
    %c0_56 = arith.constant 0 : index
    %c0_57 = arith.constant 0 : index
    %246 = vector.load %arg11[%c0_56, %c0_57] : memref<16x64xf32, #tpu.memory_space<vmem>>, vector<16x64xf32>
    %cst_58 = arith.constant dense<0.000000e+00> : vector<16x256xf32>
    %247 = tpu.matmul %246, %243, %cst_58 {dimension_numbers = #tpu.dot_dimension_numbers<[1], [0], [0], [1], [0, 0, 1, 1], [], []>} : vector<16x64xf32>, vector<64x256xf32>, vector<16x256xf32> -> vector<16x256xf32>
    %248 = vector.broadcast %245 : vector<1x256xf32> to vector<16x256xf32>
    %249 = arith.addf %247, %248 : vector<16x256xf32>
    %250 = vector.extract_strided_slice %249 {offsets = [0, 0], sizes = [2, 128], strides = [1, 1]} : vector<16x256xf32> to vector<2x128xf32>
    %251 = vector.extract_strided_slice %249 {offsets = [14, 128], sizes = [2, 128], strides = [1, 1]} : vector<16x256xf32> to vector<2x128xf32>
    %252 = tpu.concatenate %250, %251 in 0 : vector<2x128xf32>, vector<2x128xf32> -> vector<4x128xf32>
    %253 = vector.extract_strided_slice %249 {offsets = [2, 0], sizes = [2, 128], strides = [1, 1]} : vector<16x256xf32> to vector<2x128xf32>
    %254 = vector.extract_strided_slice %249 {offsets = [12, 128], sizes = [2, 128], strides = [1, 1]} : vector<16x256xf32> to vector<2x128xf32>
    %255 = tpu.concatenate %253, %254 in 0 : vector<2x128xf32>, vector<2x128xf32> -> vector<4x128xf32>
    %256 = vector.extract_strided_slice %249 {offsets = [4, 0], sizes = [2, 128], strides = [1, 1]} : vector<16x256xf32> to vector<2x128xf32>
    %257 = vector.extract_strided_slice %249 {offsets = [10, 128], sizes = [2, 128], strides = [1, 1]} : vector<16x256xf32> to vector<2x128xf32>
    %258 = tpu.concatenate %256, %257 in 0 : vector<2x128xf32>, vector<2x128xf32> -> vector<4x128xf32>
    %259 = vector.extract_strided_slice %249 {offsets = [6, 0], sizes = [2, 128], strides = [1, 1]} : vector<16x256xf32> to vector<2x128xf32>
    %260 = vector.extract_strided_slice %249 {offsets = [8, 128], sizes = [2, 128], strides = [1, 1]} : vector<16x256xf32> to vector<2x128xf32>
    %261 = tpu.concatenate %259, %260 in 0 : vector<2x128xf32>, vector<2x128xf32> -> vector<4x128xf32>
    %262 = vector.extract_strided_slice %249 {offsets = [8, 0], sizes = [2, 128], strides = [1, 1]} : vector<16x256xf32> to vector<2x128xf32>
    %263 = vector.extract_strided_slice %249 {offsets = [6, 128], sizes = [2, 128], strides = [1, 1]} : vector<16x256xf32> to vector<2x128xf32>
    %264 = tpu.concatenate %262, %263 in 0 : vector<2x128xf32>, vector<2x128xf32> -> vector<4x128xf32>
    %265 = vector.extract_strided_slice %249 {offsets = [10, 0], sizes = [2, 128], strides = [1, 1]} : vector<16x256xf32> to vector<2x128xf32>
    %266 = vector.extract_strided_slice %249 {offsets = [4, 128], sizes = [2, 128], strides = [1, 1]} : vector<16x256xf32> to vector<2x128xf32>
    %267 = tpu.concatenate %265, %266 in 0 : vector<2x128xf32>, vector<2x128xf32> -> vector<4x128xf32>
    %268 = vector.extract_strided_slice %249 {offsets = [12, 0], sizes = [2, 128], strides = [1, 1]} : vector<16x256xf32> to vector<2x128xf32>
    %269 = vector.extract_strided_slice %249 {offsets = [2, 128], sizes = [2, 128], strides = [1, 1]} : vector<16x256xf32> to vector<2x128xf32>
    %270 = tpu.concatenate %268, %269 in 0 : vector<2x128xf32>, vector<2x128xf32> -> vector<4x128xf32>
    %271 = vector.extract_strided_slice %249 {offsets = [14, 0], sizes = [2, 128], strides = [1, 1]} : vector<16x256xf32> to vector<2x128xf32>
    %272 = vector.extract_strided_slice %249 {offsets = [0, 128], sizes = [2, 128], strides = [1, 1]} : vector<16x256xf32> to vector<2x128xf32>
    %273 = tpu.concatenate %271, %272 in 0 : vector<2x128xf32>, vector<2x128xf32> -> vector<4x128xf32>
    %cst_59 = arith.constant 0.000000e+00 : f32
    %274 = vector.broadcast %cst_59 : f32 to vector<4x32xf32>
    %275 = arith.negf %252 : vector<4x128xf32>
    %276 = math.exp %275 : vector<4x128xf32>
    %cst_60 = arith.constant 1.000000e+00 : f32
    %277 = vector.broadcast %cst_60 : f32 to vector<4x128xf32>
    %278 = arith.addf %277, %276 : vector<4x128xf32>
    %279 = arith.divf %277, %278 : vector<4x128xf32>
    %280 = math.tanh %252 : vector<4x128xf32>
    %281 = arith.select %16, %280, %279 : vector<4x128xi1>, vector<4x128xf32>
    %282 = vector.extract_strided_slice %281 {offsets = [0, 0], sizes = [4, 32], strides = [1, 1]} : vector<4x128xf32> to vector<4x32xf32>
    %283 = vector.extract_strided_slice %281 {offsets = [0, 32], sizes = [4, 32], strides = [1, 1]} : vector<4x128xf32> to vector<4x32xf32>
    %284 = vector.extract_strided_slice %281 {offsets = [0, 64], sizes = [4, 32], strides = [1, 1]} : vector<4x128xf32> to vector<4x32xf32>
    %285 = vector.extract_strided_slice %281 {offsets = [0, 96], sizes = [4, 32], strides = [1, 1]} : vector<4x128xf32> to vector<4x32xf32>
    %286 = arith.mulf %283, %274 : vector<4x32xf32>
    %287 = arith.mulf %282, %284 : vector<4x32xf32>
    %288 = arith.addf %286, %287 : vector<4x32xf32>
    %289 = math.tanh %288 : vector<4x32xf32>
    %290 = arith.mulf %285, %289 : vector<4x32xf32>
    %291 = vector.extract_strided_slice %290 {offsets = [2, 0], sizes = [2, 32], strides = [1, 1]} : vector<4x32xf32> to vector<2x32xf32>
    %cst_61 = arith.constant dense<0.000000e+00> : vector<4x256xf32>
    %292 = tpu.matmul %290, %244, %cst_61 {dimension_numbers = #tpu.dot_dimension_numbers<[1], [0], [0], [1], [0, 0, 1, 1], [], []>} : vector<4x32xf32>, vector<32x256xf32>, vector<4x256xf32> -> vector<4x256xf32>
    %293 = vector.extract_strided_slice %292 {offsets = [0, 0], sizes = [4, 128], strides = [1, 1]} : vector<4x256xf32> to vector<4x128xf32>
    %294 = vector.extract_strided_slice %292 {offsets = [0, 128], sizes = [4, 128], strides = [1, 1]} : vector<4x256xf32> to vector<4x128xf32>
    %295 = arith.select %10, %293, %294 : vector<4x128xi1>, vector<4x128xf32>
    %296 = arith.addf %295, %255 : vector<4x128xf32>
    %297 = arith.negf %296 : vector<4x128xf32>
    %298 = math.exp %297 : vector<4x128xf32>
    %cst_62 = arith.constant 1.000000e+00 : f32
    %299 = vector.broadcast %cst_62 : f32 to vector<4x128xf32>
    %300 = arith.addf %299, %298 : vector<4x128xf32>
    %301 = arith.divf %299, %300 : vector<4x128xf32>
    %302 = math.tanh %296 : vector<4x128xf32>
    %303 = arith.select %16, %302, %301 : vector<4x128xi1>, vector<4x128xf32>
    %304 = vector.extract_strided_slice %303 {offsets = [0, 0], sizes = [4, 32], strides = [1, 1]} : vector<4x128xf32> to vector<4x32xf32>
    %305 = vector.extract_strided_slice %303 {offsets = [0, 32], sizes = [4, 32], strides = [1, 1]} : vector<4x128xf32> to vector<4x32xf32>
    %306 = vector.extract_strided_slice %303 {offsets = [0, 64], sizes = [4, 32], strides = [1, 1]} : vector<4x128xf32> to vector<4x32xf32>
    %307 = vector.extract_strided_slice %303 {offsets = [0, 96], sizes = [4, 32], strides = [1, 1]} : vector<4x128xf32> to vector<4x32xf32>
    %308 = arith.mulf %305, %288 : vector<4x32xf32>
    %309 = arith.mulf %304, %306 : vector<4x32xf32>
    %310 = arith.addf %308, %309 : vector<4x32xf32>
    %311 = math.tanh %310 : vector<4x32xf32>
    %312 = arith.mulf %307, %311 : vector<4x32xf32>
    %cst_63 = arith.constant dense<0.000000e+00> : vector<4x256xf32>
    %313 = tpu.matmul %312, %244, %cst_63 {dimension_numbers = #tpu.dot_dimension_numbers<[1], [0], [0], [1], [0, 0, 1, 1], [], []>} : vector<4x32xf32>, vector<32x256xf32>, vector<4x256xf32> -> vector<4x256xf32>
    %314 = vector.extract_strided_slice %313 {offsets = [0, 0], sizes = [4, 128], strides = [1, 1]} : vector<4x256xf32> to vector<4x128xf32>
    %315 = vector.extract_strided_slice %313 {offsets = [0, 128], sizes = [4, 128], strides = [1, 1]} : vector<4x256xf32> to vector<4x128xf32>
    %316 = arith.select %10, %314, %315 : vector<4x128xi1>, vector<4x128xf32>
    %317 = arith.addf %316, %258 : vector<4x128xf32>
    %318 = arith.negf %317 : vector<4x128xf32>
    %319 = math.exp %318 : vector<4x128xf32>
    %cst_64 = arith.constant 1.000000e+00 : f32
    %320 = vector.broadcast %cst_64 : f32 to vector<4x128xf32>
    %321 = arith.addf %320, %319 : vector<4x128xf32>
    %322 = arith.divf %320, %321 : vector<4x128xf32>
    %323 = math.tanh %317 : vector<4x128xf32>
    %324 = arith.select %16, %323, %322 : vector<4x128xi1>, vector<4x128xf32>
    %325 = vector.extract_strided_slice %324 {offsets = [0, 0], sizes = [4, 32], strides = [1, 1]} : vector<4x128xf32> to vector<4x32xf32>
    %326 = vector.extract_strided_slice %324 {offsets = [0, 32], sizes = [4, 32], strides = [1, 1]} : vector<4x128xf32> to vector<4x32xf32>
    %327 = vector.extract_strided_slice %324 {offsets = [0, 64], sizes = [4, 32], strides = [1, 1]} : vector<4x128xf32> to vector<4x32xf32>
    %328 = vector.extract_strided_slice %324 {offsets = [0, 96], sizes = [4, 32], strides = [1, 1]} : vector<4x128xf32> to vector<4x32xf32>
    %329 = arith.mulf %326, %310 : vector<4x32xf32>
    %330 = arith.mulf %325, %327 : vector<4x32xf32>
    %331 = arith.addf %329, %330 : vector<4x32xf32>
    %332 = math.tanh %331 : vector<4x32xf32>
    %333 = arith.mulf %328, %332 : vector<4x32xf32>
    %cst_65 = arith.constant dense<0.000000e+00> : vector<4x256xf32>
    %334 = tpu.matmul %333, %244, %cst_65 {dimension_numbers = #tpu.dot_dimension_numbers<[1], [0], [0], [1], [0, 0, 1, 1], [], []>} : vector<4x32xf32>, vector<32x256xf32>, vector<4x256xf32> -> vector<4x256xf32>
    %335 = vector.extract_strided_slice %334 {offsets = [0, 0], sizes = [4, 128], strides = [1, 1]} : vector<4x256xf32> to vector<4x128xf32>
    %336 = vector.extract_strided_slice %334 {offsets = [0, 128], sizes = [4, 128], strides = [1, 1]} : vector<4x256xf32> to vector<4x128xf32>
    %337 = arith.select %10, %335, %336 : vector<4x128xi1>, vector<4x128xf32>
    %338 = arith.addf %337, %261 : vector<4x128xf32>
    %339 = arith.negf %338 : vector<4x128xf32>
    %340 = math.exp %339 : vector<4x128xf32>
    %cst_66 = arith.constant 1.000000e+00 : f32
    %341 = vector.broadcast %cst_66 : f32 to vector<4x128xf32>
    %342 = arith.addf %341, %340 : vector<4x128xf32>
    %343 = arith.divf %341, %342 : vector<4x128xf32>
    %344 = math.tanh %338 : vector<4x128xf32>
    %345 = arith.select %16, %344, %343 : vector<4x128xi1>, vector<4x128xf32>
    %346 = vector.extract_strided_slice %345 {offsets = [0, 0], sizes = [4, 32], strides = [1, 1]} : vector<4x128xf32> to vector<4x32xf32>
    %347 = vector.extract_strided_slice %345 {offsets = [0, 32], sizes = [4, 32], strides = [1, 1]} : vector<4x128xf32> to vector<4x32xf32>
    %348 = vector.extract_strided_slice %345 {offsets = [0, 64], sizes = [4, 32], strides = [1, 1]} : vector<4x128xf32> to vector<4x32xf32>
    %349 = vector.extract_strided_slice %345 {offsets = [0, 96], sizes = [4, 32], strides = [1, 1]} : vector<4x128xf32> to vector<4x32xf32>
    %350 = arith.mulf %347, %331 : vector<4x32xf32>
    %351 = arith.mulf %346, %348 : vector<4x32xf32>
    %352 = arith.addf %350, %351 : vector<4x32xf32>
    %353 = math.tanh %352 : vector<4x32xf32>
    %354 = arith.mulf %349, %353 : vector<4x32xf32>
    %cst_67 = arith.constant dense<0.000000e+00> : vector<4x256xf32>
    %355 = tpu.matmul %354, %244, %cst_67 {dimension_numbers = #tpu.dot_dimension_numbers<[1], [0], [0], [1], [0, 0, 1, 1], [], []>} : vector<4x32xf32>, vector<32x256xf32>, vector<4x256xf32> -> vector<4x256xf32>
    %356 = vector.extract_strided_slice %355 {offsets = [0, 0], sizes = [4, 128], strides = [1, 1]} : vector<4x256xf32> to vector<4x128xf32>
    %357 = vector.extract_strided_slice %355 {offsets = [0, 128], sizes = [4, 128], strides = [1, 1]} : vector<4x256xf32> to vector<4x128xf32>
    %358 = arith.select %10, %356, %357 : vector<4x128xi1>, vector<4x128xf32>
    %359 = arith.addf %358, %264 : vector<4x128xf32>
    %360 = arith.negf %359 : vector<4x128xf32>
    %361 = math.exp %360 : vector<4x128xf32>
    %cst_68 = arith.constant 1.000000e+00 : f32
    %362 = vector.broadcast %cst_68 : f32 to vector<4x128xf32>
    %363 = arith.addf %362, %361 : vector<4x128xf32>
    %364 = arith.divf %362, %363 : vector<4x128xf32>
    %365 = math.tanh %359 : vector<4x128xf32>
    %366 = arith.select %16, %365, %364 : vector<4x128xi1>, vector<4x128xf32>
    %367 = vector.extract_strided_slice %366 {offsets = [0, 0], sizes = [4, 32], strides = [1, 1]} : vector<4x128xf32> to vector<4x32xf32>
    %368 = vector.extract_strided_slice %366 {offsets = [0, 32], sizes = [4, 32], strides = [1, 1]} : vector<4x128xf32> to vector<4x32xf32>
    %369 = vector.extract_strided_slice %366 {offsets = [0, 64], sizes = [4, 32], strides = [1, 1]} : vector<4x128xf32> to vector<4x32xf32>
    %370 = vector.extract_strided_slice %366 {offsets = [0, 96], sizes = [4, 32], strides = [1, 1]} : vector<4x128xf32> to vector<4x32xf32>
    %371 = arith.mulf %368, %352 : vector<4x32xf32>
    %372 = arith.mulf %367, %369 : vector<4x32xf32>
    %373 = arith.addf %371, %372 : vector<4x32xf32>
    %374 = math.tanh %373 : vector<4x32xf32>
    %375 = arith.mulf %370, %374 : vector<4x32xf32>
    %cst_69 = arith.constant dense<0.000000e+00> : vector<4x256xf32>
    %376 = tpu.matmul %375, %244, %cst_69 {dimension_numbers = #tpu.dot_dimension_numbers<[1], [0], [0], [1], [0, 0, 1, 1], [], []>} : vector<4x32xf32>, vector<32x256xf32>, vector<4x256xf32> -> vector<4x256xf32>
    %377 = vector.extract_strided_slice %376 {offsets = [0, 0], sizes = [4, 128], strides = [1, 1]} : vector<4x256xf32> to vector<4x128xf32>
    %378 = vector.extract_strided_slice %376 {offsets = [0, 128], sizes = [4, 128], strides = [1, 1]} : vector<4x256xf32> to vector<4x128xf32>
    %379 = arith.select %10, %377, %378 : vector<4x128xi1>, vector<4x128xf32>
    %380 = arith.addf %379, %267 : vector<4x128xf32>
    %381 = arith.negf %380 : vector<4x128xf32>
    %382 = math.exp %381 : vector<4x128xf32>
    %cst_70 = arith.constant 1.000000e+00 : f32
    %383 = vector.broadcast %cst_70 : f32 to vector<4x128xf32>
    %384 = arith.addf %383, %382 : vector<4x128xf32>
    %385 = arith.divf %383, %384 : vector<4x128xf32>
    %386 = math.tanh %380 : vector<4x128xf32>
    %387 = arith.select %16, %386, %385 : vector<4x128xi1>, vector<4x128xf32>
    %388 = vector.extract_strided_slice %387 {offsets = [0, 0], sizes = [4, 32], strides = [1, 1]} : vector<4x128xf32> to vector<4x32xf32>
    %389 = vector.extract_strided_slice %387 {offsets = [0, 32], sizes = [4, 32], strides = [1, 1]} : vector<4x128xf32> to vector<4x32xf32>
    %390 = vector.extract_strided_slice %387 {offsets = [0, 64], sizes = [4, 32], strides = [1, 1]} : vector<4x128xf32> to vector<4x32xf32>
    %391 = vector.extract_strided_slice %387 {offsets = [0, 96], sizes = [4, 32], strides = [1, 1]} : vector<4x128xf32> to vector<4x32xf32>
    %392 = arith.mulf %389, %373 : vector<4x32xf32>
    %393 = arith.mulf %388, %390 : vector<4x32xf32>
    %394 = arith.addf %392, %393 : vector<4x32xf32>
    %395 = math.tanh %394 : vector<4x32xf32>
    %396 = arith.mulf %391, %395 : vector<4x32xf32>
    %cst_71 = arith.constant dense<0.000000e+00> : vector<4x256xf32>
    %397 = tpu.matmul %396, %244, %cst_71 {dimension_numbers = #tpu.dot_dimension_numbers<[1], [0], [0], [1], [0, 0, 1, 1], [], []>} : vector<4x32xf32>, vector<32x256xf32>, vector<4x256xf32> -> vector<4x256xf32>
    %398 = vector.extract_strided_slice %397 {offsets = [0, 0], sizes = [4, 128], strides = [1, 1]} : vector<4x256xf32> to vector<4x128xf32>
    %399 = vector.extract_strided_slice %397 {offsets = [0, 128], sizes = [4, 128], strides = [1, 1]} : vector<4x256xf32> to vector<4x128xf32>
    %400 = arith.select %10, %398, %399 : vector<4x128xi1>, vector<4x128xf32>
    %401 = arith.addf %400, %270 : vector<4x128xf32>
    %402 = arith.negf %401 : vector<4x128xf32>
    %403 = math.exp %402 : vector<4x128xf32>
    %cst_72 = arith.constant 1.000000e+00 : f32
    %404 = vector.broadcast %cst_72 : f32 to vector<4x128xf32>
    %405 = arith.addf %404, %403 : vector<4x128xf32>
    %406 = arith.divf %404, %405 : vector<4x128xf32>
    %407 = math.tanh %401 : vector<4x128xf32>
    %408 = arith.select %16, %407, %406 : vector<4x128xi1>, vector<4x128xf32>
    %409 = vector.extract_strided_slice %408 {offsets = [0, 0], sizes = [4, 32], strides = [1, 1]} : vector<4x128xf32> to vector<4x32xf32>
    %410 = vector.extract_strided_slice %408 {offsets = [0, 32], sizes = [4, 32], strides = [1, 1]} : vector<4x128xf32> to vector<4x32xf32>
    %411 = vector.extract_strided_slice %408 {offsets = [0, 64], sizes = [4, 32], strides = [1, 1]} : vector<4x128xf32> to vector<4x32xf32>
    %412 = vector.extract_strided_slice %408 {offsets = [0, 96], sizes = [4, 32], strides = [1, 1]} : vector<4x128xf32> to vector<4x32xf32>
    %413 = arith.mulf %410, %394 : vector<4x32xf32>
    %414 = arith.mulf %409, %411 : vector<4x32xf32>
    %415 = arith.addf %413, %414 : vector<4x32xf32>
    %416 = math.tanh %415 : vector<4x32xf32>
    %417 = arith.mulf %412, %416 : vector<4x32xf32>
    %cst_73 = arith.constant dense<0.000000e+00> : vector<4x256xf32>
    %418 = tpu.matmul %417, %244, %cst_73 {dimension_numbers = #tpu.dot_dimension_numbers<[1], [0], [0], [1], [0, 0, 1, 1], [], []>} : vector<4x32xf32>, vector<32x256xf32>, vector<4x256xf32> -> vector<4x256xf32>
    %419 = vector.extract_strided_slice %418 {offsets = [0, 0], sizes = [4, 128], strides = [1, 1]} : vector<4x256xf32> to vector<4x128xf32>
    %420 = vector.extract_strided_slice %418 {offsets = [0, 128], sizes = [4, 128], strides = [1, 1]} : vector<4x256xf32> to vector<4x128xf32>
    %421 = arith.select %10, %419, %420 : vector<4x128xi1>, vector<4x128xf32>
    %422 = arith.addf %421, %273 : vector<4x128xf32>
    %423 = arith.negf %422 : vector<4x128xf32>
    %424 = math.exp %423 : vector<4x128xf32>
    %cst_74 = arith.constant 1.000000e+00 : f32
    %425 = vector.broadcast %cst_74 : f32 to vector<4x128xf32>
    %426 = arith.addf %425, %424 : vector<4x128xf32>
    %427 = arith.divf %425, %426 : vector<4x128xf32>
    %428 = math.tanh %422 : vector<4x128xf32>
    %429 = arith.select %16, %428, %427 : vector<4x128xi1>, vector<4x128xf32>
    %430 = vector.extract_strided_slice %429 {offsets = [0, 0], sizes = [4, 32], strides = [1, 1]} : vector<4x128xf32> to vector<4x32xf32>
    %431 = vector.extract_strided_slice %429 {offsets = [0, 32], sizes = [4, 32], strides = [1, 1]} : vector<4x128xf32> to vector<4x32xf32>
    %432 = vector.extract_strided_slice %429 {offsets = [0, 64], sizes = [4, 32], strides = [1, 1]} : vector<4x128xf32> to vector<4x32xf32>
    %433 = vector.extract_strided_slice %429 {offsets = [0, 96], sizes = [4, 32], strides = [1, 1]} : vector<4x128xf32> to vector<4x32xf32>
    %434 = arith.mulf %431, %415 : vector<4x32xf32>
    %435 = arith.mulf %430, %432 : vector<4x32xf32>
    %436 = arith.addf %434, %435 : vector<4x32xf32>
    %437 = math.tanh %436 : vector<4x32xf32>
    %438 = arith.mulf %433, %437 : vector<4x32xf32>
    %439 = vector.extract_strided_slice %438 {offsets = [0, 0], sizes = [2, 32], strides = [1, 1]} : vector<4x32xf32> to vector<2x32xf32>
    %440 = tpu.concatenate %439, %291 in 1 : vector<2x32xf32>, vector<2x32xf32> -> vector<2x64xf32>
    %c0_75 = arith.constant 0 : index
    %c0_76 = arith.constant 0 : index
    %441 = vector.load %arg8[%c0_75, %c0_76] : memref<64x5xf32, #tpu.memory_space<vmem>>, vector<64x5xf32>
    %cst_77 = arith.constant dense<0.000000e+00> : vector<2x5xf32>
    %442 = tpu.matmul %440, %441, %cst_77 {dimension_numbers = #tpu.dot_dimension_numbers<[1], [0], [0], [1], [0, 0, 1, 1], [], []>} : vector<2x64xf32>, vector<64x5xf32>, vector<2x5xf32> -> vector<2x5xf32>
    %c0_78 = arith.constant 0 : index
    %c0_79 = arith.constant 0 : index
    %443 = vector.load %arg9[%c0_78, %c0_79] : memref<1x5xf32, #tpu.memory_space<vmem>>, vector<1x5xf32>
    %444 = vector.broadcast %443 : vector<1x5xf32> to vector<2x5xf32>
    %445 = arith.addf %442, %444 : vector<2x5xf32>
    %c0_80 = arith.constant 0 : index
    %c0_81 = arith.constant 0 : index
    %446 = vector.load %arg10[%c0_80, %c0_81] : memref<2x5xf32, #tpu.memory_space<vmem>>, vector<2x5xf32>
    tpu.vector_store %arg10[%c0_80, %c0_81], %445 {strides = array<i32>} : memref<2x5xf32, #tpu.memory_space<vmem>>, vector<2x5xf32>,
    return
  }
}

</mosaic_0001>

<bundles_post_ra>
// kernel: textrnn_forward.1
= control target key start
LH: loop header
LB: loop body
LE: loop exit
PB: predicated region body
PF: predicated region fallthrough
CT: control target
= control target key end

     0   :  { %15 = vsyncpa [#allocation4], 0  ;;  %s3208_s0 = inlined_call_operand.vmem [shape: s32[16,1], index: 0, kind: input, shape index: {}]   ;;  %s3209_s1 = inlined_call_operand.vmem [shape: f32[56,32], index: 1, kind: input, shape index: {}]   ;;  %s3210_s2 = inlined_call_operand.vmem [shape: f32[32,256], index: 2, kind: input, shape index: {}]   ;;  %s3211_s3 = inlined_call_operand.vmem [shape: f32[32,256], index: 3, kind: input, shape index: {}]   ;;  %s3212_s4 = inlined_call_operand.vmem [shape: f32[1,256], index: 4, kind: input, shape index: {}]   ;;  %s3213_s5 = inlined_call_operand.vmem [shape: f32[64,256], index: 5, kind: input, shape index: {}]   ;;  %s3214_s6 = inlined_call_operand.vmem [shape: f32[32,256], index: 6, kind: input, shape index: {}]   ;;  %s3215_s7 = inlined_call_operand.vmem [shape: f32[1,256], index: 7, kind: input, shape index: {}]   ;;  %s3216_s8 = inlined_call_operand.vmem [shape: f32[64,5], index: 8, kind: input, shape index: {}]   ;;  %s3217_s9 = inlined_call_operand.hbm [shape: f32[1,5], index: 9, kind: input, shape index: {}]   ;;  %s3218_s10 = inlined_call_operand.hbm [shape: f32[2,5], index: 10, kind: output, shape index: {}]  }
   0x1   :  { %16 = vsyncpa [#allocation5], 0  ;;  %s2564_s13 = smov [#allocation3]   ;;  %s2516_s17 = scalar_lea.hbm %s3217_s9, 16 }
   0x2   :  { %s41_s14 = sshll.u32 %s2564_s13, 4  ;;  %p2517_p0 = scmp.ne.s32.totalorder %s3217_s9, %s2516_s17  ;;  %s42_s14 = int_to_ptr.vmem [resolvable:$true] %s41_s14 }
   0x3   :  { %p2520_p1 = scmp.lt.u32.totalorder %s2516_s17, %s3217_s9 }
   0x5   :  { %p2522_p2 = pnand %p2520_p1, %p2517_p0 }
   0x7   :  { %2525 = shalt.err (!%p2522_p2)
}
   0x8   :  { %s2526_s22 = scalar_lea.vmem %s42_s14, 16  ;;  %s2530_s23 = scalar_lea.vmem %s42_s14, 32 }
   0x9   :  { %p2527_p3 = scmp.ne.s32.totalorder %s42_s14, %s2526_s22  ;;  %p2531_p4 = scmp.lt.s32.totalorder %s42_s14, %s42_s14 }
   0xa   :  { %p2532_p5 = scmp.lt.s32.totalorder %s2530_s23, %s2526_s22 }
   0xc   :  { %p2533_p6 = por %p2532_p5, %p2531_p4 }
   0xe   :  { %p2534_p7 = pnand %p2533_p6, %p2527_p3 }
  0x10   :  { %2537 = shalt.err (!%p2534_p7)
}
  0x11   :  { %44 = dma.hbm_to_vmem [thread:$0]  %s3217_s9, 16, %s42_s14, [#allocation4]  }
  0x12   :  { %2560 = dma.done.wait [#allocation4], 16  }
  0x13   :  { %2561 = vsyncadd [#allocation4], 4294967280  ;;  %v2565_v0 = vmov 0   ;;  %v48_v1 = vld [vmem:[%s3208_s0] sm:$0xff]  ;;  %v65_v3 = vld [vmem:[%s3209_s1 + $0x8] sm:$0xff]  ;;  %v2566_v9 = vmov 0.0   ;;  %v50_v17 = vlaneseq }
  0x14   :  { %2387 = vset.pattern.permute.xlu0 %v2565_v0  ;;  %v64_v2 = vld [vmem:[%s3209_s1] sm:$0xff]  ;;  %v66_v4 = vld [vmem:[%s3209_s1 + $0x10] sm:$0xff]  ;;  %v67_v5 = vld [vmem:[%s3209_s1 + $0x18] sm:$0xff]  ;;  %410 = vmatprep.mubr.f32.mxu1 %v2566_v9  ;;  %vm71_vm0 = vcmask 457728   ;;  %vm187_vm3 = vcmask 261120   ;;  %vm274_vm4 = vcmask 1041408  }
  0x15   :  { %53 = vperm.xlu0 %2387, %v48_v1   ;;  %v49_v6 = vld [vmem:[%s3208_s0 + $0x8] sm:$0xff]  ;;  %v2219_v7 = vpack.c.bf16 %v65_v3, %v64_v2  ;;  %v2223_v8 = vpack.c.bf16 %v67_v5, %v66_v4  ;;  %v68_v10 = vld [vmem:[%s3209_s1 + $0x20] sm:$0xff]  ;;  %v70_v13 = vld [vmem:[%s3209_s1 + $0x30] sm:$0xff]  ;;  %v2673_v18 = vand.u32 127, %v50_v17  ;;  %v2702_v34 = vshrl.u32 %v50_v17, 7  ;;  %s2568_s17 = smov 32  }
  0x16   :  { %v69_v11 = vld [vmem:[%s3209_s1 + $0x28] sm:$0xff]  ;;  %v162_v15 = vld [vmem:[%s3210_s2 + $0x18] sm:$0xff]  ;;  %v159_v20 = vld [vmem:[%s3210_s2] sm:$0xff]  ;;  %vm337_vm8 = vcmask 254976   ;;  %vm342_vm10 = vcmask 519426   ;;  %vm1145_vm11 = vcmask 523264  }
  0x17   :  { %2220 = vmatprep.subr.bf16.mxu0 %v2219_v7  ;;  %v2227_v12 = vpack.c.bf16 %v69_v11, %v68_v10  ;;  %v160_v14 = vld [vmem:[%s3210_s2 + $0x8] sm:$0xff]  ;;  %v161_v21 = vld [vmem:[%s3210_s2 + $0x10] sm:$0xff]  ;;  %v166_v24 = vld [vmem:[%s3210_s2 + $0x38] sm:$0xff]  ;;  %v179_v35 = vsub.s32 0, %v2702_v34  ;;  %v183_v37 = vsub.s32 1, %v2702_v34  ;;  %vm156_vm5 = vcmp.ge.s32.totalorder %v2673_v18, 64 }
  0x18   :  { %2222 = vmatpush3.bf16.msra.mxu0 %v2219_v7  ;;  %v2231_v16 = vpack.c.bf16 %v162_v15, %v160_v14  ;;  %v164_v23 = vld [vmem:[%s3210_s2 + $0x28] sm:$0xff]  ;;  %v2233_v26 = vpack.c.bf16 %v161_v21, %v159_v20  ;;  %v163_v28 = vld [vmem:[%s3210_s2 + $0x20] sm:$0xff]  ;;  %v165_v29 = vld [vmem:[%s3210_s2 + $0x30] sm:$0xff]  ;;  %vm157_vm6 = vcmp.lt.s32.totalorder %v2673_v18, 96  ;;  %vm155_vm9 = vcmp.lt.s32.totalorder %v2702_v34, 2 }
  0x19   :  { %56 = vperm.xlu0 %2387, %v49_v6   ;;  %2224 = vmatprep.subr.bf16.mxu0 %v2223_v8  ;;  %v2235_v27 = vpack.c.bf16 %v166_v24, %v164_v23  ;;  %v2237_v31 = vpack.c.bf16 %v165_v29, %v163_v28  ;;  %v175_v36 = vld [vmem:[%s3212_s4] sm:$0x3]  ;;  %vm2737_vm7 = vmand %vm156_vm5, %vm157_vm6  ;;  %s2567_s4 = smov 64   ;;  %v168_v17 = vld [vmem:[%s3211_s3 + $0x8] sm:$0xff]  ;;  %vm2570_vm12 = vmmov 0   ;;  %vm2108_vm13 = vcmask 33792  }
  0x1a   :  { %v180_v38 = vrot.slane %v175_v36, %v179_v35  ;;  %v184_v39 = vrot.slane %v175_v36, %v183_v37  ;;  %v169_v21 = vld [vmem:[%s3211_s3 + $0x10] sm:$0xff]  ;;  %v174_v23 = vld [vmem:[%s3211_s3 + $0x38] sm:$0xff] }
  0x1b   :  { %v2022_v7 = vld [vmem:[%s3216_s8 + $0x10] sm:$0xff] }
  0x1c   :  { %2226 = vmatpush3.bf16.msra.mxu0 %v2223_v8 }
  0x1d   :  { %2228 = vmatprep.subr.bf16.mxu0 %v2227_v12 }
  0x20   :  { %2230 = vmatpush3.bf16.msra.mxu0 %v2227_v12 }
  0x21   :  { %2195 = vmatprep.subr.mxu0 %v70_v13 }
  0x24   :  { %2196 = vmatpush3.msra.mxu0 %v70_v13 }
  0x25   :  { %2232 = vmatprep.subr.bf16.mxu0 %v2231_v16 }
  0x94   :  { %v54_v19 = vpop.permute.xlu0 %53 }
  0x95   :  { %vm58_vm1 = vcmp.eq.s32.totalorder %v2673_v18, %v54_v19  ;;  %v167_v19 = vld [vmem:[%s3211_s3] sm:$0xff] }
  0x96   :  { %v2125_v22 = vsel %vm58_vm1, 1.0, %v2566_v9  ;;  %v2765_v24 = vpack.c.bf16 %v169_v21, %v167_v19 }
  0x97   :  { %2197 = vmatprep.mubr.msk.f32.mxu0 %vm71_vm0, %v2125_v22  ;;  %v172_v22 = vld [vmem:[%s3211_s3 + $0x28] sm:$0xff] }
  0x98   :  { %v57_v25 = vpop.permute.xlu0 %56 }
  0x99   :  { %vm59_vm2 = vcmp.eq.s32.totalorder %v2673_v18, %v57_v25  ;;  %v170_v18 = vld [vmem:[%s3211_s3 + $0x18] sm:$0xff]  ;;  %v2767_v25 = vpack.c.bf16 %v174_v23, %v172_v22 }
  0x9a   :  { %v2126_v30 = vsel %vm59_vm2, 1.0, %v2566_v9  ;;  %v2754_v20 = vpack.c.bf16 %v170_v18, %v168_v17 }
  0x9b   :  { %2198 = vmatmul.mubr.msk.f32.vlgmr.msra.gmra.mrb[0].mxu0 %vm71_vm0, %v2126_v30 }
  0x9c   :  { %2234 = vmatpush1.bf16.msra.mxu0 %v2233_v26  ;;  %258 = vmatprep.mubr.f32.mxu0 %v2566_v9  ;;  %v171_v26 = vld [vmem:[%s3211_s3 + $0x20] sm:$0xff] }
  0x9d   :  { %2236 = vmatprep.subr.bf16.mxu0 %v2235_v27  ;;  %v173_v27 = vld [vmem:[%s3211_s3 + $0x30] sm:$0xff]  ;;  %2240 = vmatprep.subr.bf16.mxu1 %v2754_v20 }
  0x9e   :  { %2242 = vmatpush1.bf16.msra.mxu1 %v2765_v24  ;;  %v2778_v28 = vpack.c.bf16 %v173_v27, %v171_v26 }
  0x9f   :  { %2244 = vmatprep.subr.bf16.mxu1 %v2767_v25 }
  0xa0   :  { %2238 = vmatpush1.bf16.msra.mxu0 %v2237_v31 }
  0xa1   :  { %2248 = vmatprep.subr.bf16.mxu0 %v2754_v20 }
  0xa2   :  { %2246 = vmatpush1.bf16.msra.mxu1 %v2778_v28 }
  0xa3   :  { %2256 = vmatprep.subr.bf16.mxu1 %v2754_v20 }
 0x16e   :  { %v2199_v32 = vpop.f32.mrb[0].mxu0 }
 0x16f   :  { %v144_v33 = vpop.f32.mrb[1].mxu0 }
 0x170   :  { %2129 = vmatmul.mubr.msk.f32.vlgmr.msra.gmra.mrb[2].mxu0 %vm187_vm3, %v144_v33 }
 0x171   :  { %264 = vmatprep.mubr.f32.mxu0 %v2566_v9  ;;  %2250 = vmatpush1.bf16.msra.mxu0 %v2765_v24 }
 0x172   :  { %2252 = vmatprep.subr.bf16.mxu0 %v2767_v25 }
 0x174   :  { %2130 = vmatmul.mubr.msk.f32.gmra.mrb[4].mxu0 %vm187_vm3, %v2199_v32 }
 0x175   :  { %519 = vmatprep.mubr.f32.mxu0 %v2566_v9  ;;  %2254 = vmatpush1.bf16.msra.mxu0 %v2778_v28 }
 0x176   :  { %2264 = vmatprep.subr.bf16.mxu0 %v2754_v20 }
 0x243   :  { %v260_v40 = vpop.f32.mrb[2].mxu0 }
 0x244   :  { %v261_v41 = vadd.f32 %v260_v40, %v180_v38  ;;  %v262_v42 = vpop.f32.mrb[3].mxu0 }
 0x245   :  { %v263_v43 = vadd.f32 %v262_v42, %v184_v39 }
 0x246   :  { %v277_v48 = vrot.slane %v261_v41, 2  ;;  %v282_v49 = vrot.slane %v261_v41, 4  ;;  %v285_v51 = vrot.slane %v261_v41, 6 }
 0x247   :  { %v266_v44 = vpop.f32.mrb[4].mxu0  ;;  %v291_v45 = vrot.slane %v263_v43, 4  ;;  %v297_v52 = vrot.slane %v263_v43, 2  ;;  %v305_v53 = vrot.slane %v263_v43, 6 }
 0x248   :  { %v267_v46 = vadd.f32 %v266_v44, %v180_v38  ;;  %v268_v47 = vpop.f32.mrb[5].mxu0 }
 0x249   :  { %v269_v50 = vadd.f32 %v268_v47, %v184_v39 }
 0x24a   :  { %v2714_v54 = vsel %vm274_vm4, %v267_v46, %v291_v45  ;;  %v295_v55 = vrot.slane %v267_v46, 2  ;;  %v300_v56 = vrot.slane %v267_v46, 4  ;;  %v303_v57 = vrot.slane %v267_v46, 6 }
 0x24b   :  { %v272_v58 = vrot.slane %v269_v50, 4  ;;  %v279_v59 = vrot.slane %v269_v50, 2  ;;  %v2717_v60 = vsel %vm274_vm4, %v282_v49, %v269_v50  ;;  %v287_v61 = vrot.slane %v269_v50, 6 }
 0x24c   :  { %v2720_v62 = vsel %vm274_vm4, %v295_v55, %v297_v52  ;;  %v2723_v63 = vsel %vm274_vm4, %v300_v56, %v263_v43  ;;  %v2726_v0 = vsel %vm274_vm4, %v303_v57, %v305_v53 }
 0x24d   :  { %v275_v1 = vsel %vm274_vm4, %v261_v41, %v272_v58  ;;  %v2730_v2 = vsel %vm274_vm4, %v277_v48, %v279_v59  ;;  %v2733_v3 = vsel %vm274_vm4, %v285_v51, %v287_v61 }
 0x24e   :  { %v2131_v4 = vmul.f32 -1.442695, %v275_v1 }
 0x250   :  { %2388 = vpow2.f32 %v2131_v4 }
 0x251   :  { %2390 = vtanh.f32 %v275_v1 }
 0x25a   :  { %v2389_v5 = vpop.eup %2388 }
 0x25b   :  { %v311_v6 = vadd.f32 1.0, %v2389_v5  ;;  %v2391_v8 = vpop.eup %2390 }
 0x25d   :  { %2392 = vrcp.f32 %v311_v6 }
 0x267   :  { %v2393_v10 = vpop.eup %2392 }
 0x268   :  { %v315_v11 = vsel %vm2737_vm7, %v2391_v8, %v2393_v10 }
 0x269   :  { %318 = vrot.lane.b32.xlu1 %v315_v11, %s2567_s4  ;;  %v316_v14 = vmul.f32 0.0, %v315_v11 }
 0x2db   :  { %v319_v12 = vpop.permute.xlu1 %318 }
 0x2dc   :  { %v321_v13 = vmul.f32 %v319_v12, %v315_v11 }
 0x2de   :  { %323 = vrot.lane.b32.xlu1 %v321_v13, %s2568_s17 }
 0x350   :  { %v324_v15 = vpop.permute.xlu1 %323 }
 0x351   :  { %v326_v16 = vadd.f32 %v324_v15, %v316_v14 }
 0x353   :  { %2394 = vtanh.f32 %v326_v16 }
 0x35d   :  { %v2395_v29 = vpop.eup %2394 }
 0x35e   :  { %329 = vrot.lane.b32.xlu0 %v2395_v29, %s2567_s4 }
 0x3d0   :  { %v330_v30 = vpop.permute.xlu0 %329 }
 0x3d1   :  { %v2788_v31 = vmul.f32 %v330_v30, %v315_v11 }
 0x3d3   :  { %334 = vrot.lane.b32.xlu1 %v2788_v31, %s2568_s17 }
 0x445   :  { %v335_v32 = vpop.permute.xlu1 %334 }
 0x446   :  { %338 = vst.msk [vmem:[#allocation2] sm:$0x3] %vm337_vm8, %v335_v32  ;;  %2132 = vmatmul.mubr.msk.f32.vlgmr.msra.gmra.mrb[0].mxu1 %vm187_vm3, %v335_v32 }
 0x447   :  { %2258 = vmatpush1.bf16.msra.mxu1 %v2765_v24  ;;  %628 = vmatprep.mubr.f32.mxu1 %v2566_v9 }
 0x448   :  { %2260 = vmatprep.subr.bf16.mxu1 %v2767_v25 }
 0x44b   :  { %2262 = vmatpush1.bf16.msra.mxu1 %v2778_v28 }
 0x44c   :  { %2272 = vmatprep.subr.bf16.mxu1 %v2754_v20 }
 0x519   :  { %v412_v33 = vpop.f32.mrb[0].mxu1 }
 0x51a   :  { %v414_v36 = vpop.f32.mrb[1].mxu1 }
 0x51b   :  { %v417_v38 = vsel %vm155_vm9, %v412_v33, %v414_v36 }
 0x51c   :  { %v418_v39 = vadd.f32 %v417_v38, %v2730_v2 }
 0x51e   :  { %v2133_v40 = vmul.f32 -1.442695, %v418_v39 }
 0x520   :  { %2396 = vpow2.f32 %v2133_v40 }
 0x521   :  { %2398 = vtanh.f32 %v418_v39 }
 0x52a   :  { %v2397_v41 = vpop.eup %2396 }
 0x52b   :  { %v422_v42 = vadd.f32 1.0, %v2397_v41  ;;  %v2399_v43 = vpop.eup %2398 }
 0x52d   :  { %2400 = vrcp.f32 %v422_v42 }
 0x537   :  { %v2401_v44 = vpop.eup %2400 }
 0x538   :  { %v426_v45 = vsel %vm2737_vm7, %v2399_v43, %v2401_v44 }
 0x539   :  { %429 = vrot.lane.b32.xlu0 %v426_v45, %s2567_s4  ;;  %v427_v48 = vmul.f32 %v426_v45, %v326_v16 }
 0x5ab   :  { %v430_v46 = vpop.permute.xlu0 %429 }
 0x5ac   :  { %v432_v47 = vmul.f32 %v430_v46, %v426_v45 }
 0x5ae   :  { %434 = vrot.lane.b32.xlu1 %v432_v47, %s2568_s17 }
 0x620   :  { %v435_v49 = vpop.permute.xlu1 %434 }
 0x621   :  { %v437_v50 = vadd.f32 %v435_v49, %v427_v48 }
 0x623   :  { %2402 = vtanh.f32 %v437_v50 }
 0x62d   :  { %v2403_v51 = vpop.eup %2402 }
 0x62e   :  { %440 = vrot.lane.b32.xlu0 %v2403_v51, %s2567_s4 }
 0x6a0   :  { %v441_v52 = vpop.permute.xlu0 %440 }
 0x6a1   :  { %v2808_v53 = vmul.f32 %v441_v52, %v426_v45 }
 0x6a3   :  { %445 = vrot.lane.b32.xlu1 %v2808_v53, %s2568_s17 }
 0x715   :  { %v446_v55 = vpop.permute.xlu1 %445 }
 0x716   :  { %448 = vst.msk [vmem:[#allocation2 + $0x2] sm:$0x3] %vm337_vm8, %v446_v55  ;;  %2134 = vmatmul.mubr.msk.f32.vlgmr.msra.gmra.mrb[6].mxu0 %vm187_vm3, %v446_v55 }
 0x717   :  { %2266 = vmatpush1.bf16.msra.mxu0 %v2765_v24  ;;  %737 = vmatprep.mubr.f32.mxu0 %v2566_v9 }
 0x718   :  { %2268 = vmatprep.subr.bf16.mxu0 %v2767_v25 }
 0x71b   :  { %2270 = vmatpush1.bf16.msra.mxu0 %v2778_v28 }
 0x71c   :  { %2280 = vmatprep.subr.bf16.mxu0 %v2754_v20 }
 0x7e9   :  { %v521_v56 = vpop.f32.mrb[6].mxu0 }
 0x7ea   :  { %v523_v57 = vpop.f32.mrb[7].mxu0 }
 0x7eb   :  { %v526_v58 = vsel %vm155_vm9, %v521_v56, %v523_v57 }
 0x7ec   :  { %v527_v59 = vadd.f32 %v526_v58, %v2717_v60 }
 0x7ee   :  { %v2135_v61 = vmul.f32 -1.442695, %v527_v59 }
 0x7f0   :  { %2404 = vpow2.f32 %v2135_v61 }
 0x7f1   :  { %2406 = vtanh.f32 %v527_v59 }
 0x7fa   :  { %v2405_v1 = vpop.eup %2404 }
 0x7fb   :  { %v531_v2 = vadd.f32 1.0, %v2405_v1  ;;  %v2407_v4 = vpop.eup %2406 }
 0x7fd   :  { %2408 = vrcp.f32 %v531_v2 }
 0x807   :  { %v2409_v5 = vpop.eup %2408 }
 0x808   :  { %v535_v6 = vsel %vm2737_vm7, %v2407_v4, %v2409_v5 }
 0x809   :  { %538 = vrot.lane.b32.xlu0 %v535_v6, %s2567_s4  ;;  %v536_v11 = vmul.f32 %v535_v6, %v437_v50 }
 0x87b   :  { %v539_v8 = vpop.permute.xlu0 %538 }
 0x87c   :  { %v541_v10 = vmul.f32 %v539_v8, %v535_v6 }
 0x87e   :  { %543 = vrot.lane.b32.xlu1 %v541_v10, %s2568_s17 }
 0x8f0   :  { %v544_v12 = vpop.permute.xlu1 %543 }
 0x8f1   :  { %v546_v60 = vadd.f32 %v544_v12, %v536_v11 }
 0x8f3   :  { %2410 = vtanh.f32 %v546_v60 }
 0x8fd   :  { %v2411_v13 = vpop.eup %2410 }
 0x8fe   :  { %549 = vrot.lane.b32.xlu0 %v2411_v13, %s2567_s4 }
 0x970   :  { %v550_v14 = vpop.permute.xlu0 %549 }
 0x971   :  { %v2827_v15 = vmul.f32 %v550_v14, %v535_v6 }
 0x973   :  { %554 = vrot.lane.b32.xlu1 %v2827_v15, %s2568_s17 }
 0x9e5   :  { %v555_v16 = vpop.permute.xlu1 %554 }
 0x9e6   :  { %557 = vst.msk [vmem:[#allocation2 + $0x4] sm:$0x3] %vm337_vm8, %v555_v16  ;;  %2136 = vmatmul.mubr.msk.f32.vlgmr.msra.gmra.mrb[2].mxu1 %vm187_vm3, %v555_v16 }
 0x9e7   :  { %2274 = vmatpush1.bf16.msra.mxu1 %v2765_v24  ;;  %846 = vmatprep.mubr.f32.mxu1 %v2566_v9 }
 0x9e8   :  { %2276 = vmatprep.subr.bf16.mxu1 %v2767_v25 }
 0x9eb   :  { %2278 = vmatpush1.bf16.msra.mxu1 %v2778_v28 }
 0x9ec   :  { %2288 = vmatprep.subr.bf16.mxu1 %v2754_v20 }
 0xab9   :  { %v630_v17 = vpop.f32.mrb[2].mxu1 }
 0xaba   :  { %v632_v18 = vpop.f32.mrb[3].mxu1 }
 0xabb   :  { %v635_v19 = vsel %vm155_vm9, %v630_v17, %v632_v18 }
 0xabc   :  { %v636_v21 = vadd.f32 %v635_v19, %v2733_v3 }
 0xabe   :  { %v2137_v22 = vmul.f32 -1.442695, %v636_v21 }
 0xac0   :  { %2412 = vpow2.f32 %v2137_v22 }
 0xac1   :  { %2414 = vtanh.f32 %v636_v21 }
 0xaca   :  { %v2413_v23 = vpop.eup %2412 }
 0xacb   :  { %v640_v26 = vadd.f32 1.0, %v2413_v23  ;;  %v2415_v27 = vpop.eup %2414 }
 0xacd   :  { %2416 = vrcp.f32 %v640_v26 }
 0xad7   :  { %v2417_v29 = vpop.eup %2416 }
 0xad8   :  { %v644_v30 = vsel %vm2737_vm7, %v2415_v27, %v2417_v29 }
 0xad9   :  { %647 = vrot.lane.b32.xlu0 %v644_v30, %s2567_s4  ;;  %v645_v33 = vmul.f32 %v644_v30, %v546_v60 }
 0xb4b   :  { %v648_v20 = vpop.permute.xlu0 %647 }
 0xb4c   :  { %v650_v32 = vmul.f32 %v648_v20, %v644_v30 }
 0xb4e   :  { %652 = vrot.lane.b32.xlu1 %v650_v32, %s2568_s17 }
 0xbc0   :  { %v653_v36 = vpop.permute.xlu1 %652 }
 0xbc1   :  { %v655_v3 = vadd.f32 %v653_v36, %v645_v33 }
 0xbc3   :  { %2418 = vtanh.f32 %v655_v3 }
 0xbcd   :  { %v2419_v38 = vpop.eup %2418 }
 0xbce   :  { %658 = vrot.lane.b32.xlu0 %v2419_v38, %s2567_s4 }
 0xc40   :  { %v659_v39 = vpop.permute.xlu0 %658 }
 0xc41   :  { %v2846_v40 = vmul.f32 %v659_v39, %v644_v30 }
 0xc43   :  { %663 = vrot.lane.b32.xlu1 %v2846_v40, %s2568_s17 }
 0xcb5   :  { %v664_v41 = vpop.permute.xlu1 %663 }
 0xcb6   :  { %666 = vst.msk [vmem:[#allocation2 + $0x6] sm:$0x3] %vm337_vm8, %v664_v41  ;;  %2138 = vmatmul.mubr.msk.f32.vlgmr.msra.gmra.mrb[8].mxu0 %vm187_vm3, %v664_v41 }
 0xcb7   :  { %2282 = vmatpush1.bf16.msra.mxu0 %v2765_v24  ;;  %955 = vmatprep.mubr.f32.mxu0 %v2566_v9 }
 0xcb8   :  { %2284 = vmatprep.subr.bf16.mxu0 %v2767_v25 }
 0xcbb   :  { %2286 = vmatpush1.bf16.msra.mxu0 %v2778_v28 }
 0xd89   :  { %v739_v42 = vpop.f32.mrb[8].mxu0 }
 0xd8a   :  { %v741_v43 = vpop.f32.mrb[9].mxu0 }
 0xd8b   :  { %v744_v44 = vsel %vm155_vm9, %v739_v42, %v741_v43 }
 0xd8c   :  { %v745_v45 = vadd.f32 %v744_v44, %v2714_v54 }
 0xd8e   :  { %v2139_v46 = vmul.f32 -1.442695, %v745_v45 }
 0xd90   :  { %2420 = vpow2.f32 %v2139_v46 }
 0xd91   :  { %2422 = vtanh.f32 %v745_v45 }
 0xd9a   :  { %v2421_v47 = vpop.eup %2420 }
 0xd9b   :  { %v749_v48 = vadd.f32 1.0, %v2421_v47  ;;  %v2423_v49 = vpop.eup %2422 }
 0xd9d   :  { %2424 = vrcp.f32 %v749_v48 }
 0xda7   :  { %v2425_v50 = vpop.eup %2424 }
 0xda8   :  { %v753_v51 = vsel %vm2737_vm7, %v2423_v49, %v2425_v50 }
 0xda9   :  { %756 = vrot.lane.b32.xlu0 %v753_v51, %s2567_s4  ;;  %v754_v56 = vmul.f32 %v753_v51, %v655_v3 }
 0xe1b   :  { %v757_v52 = vpop.permute.xlu0 %756 }
 0xe1c   :  { %v759_v55 = vmul.f32 %v757_v52, %v753_v51 }
 0xe1e   :  { %761 = vrot.lane.b32.xlu1 %v759_v55, %s2568_s17 }
 0xe90   :  { %v762_v57 = vpop.permute.xlu1 %761 }
 0xe91   :  { %v764_v54 = vadd.f32 %v762_v57, %v754_v56 }
 0xe93   :  { %2426 = vtanh.f32 %v764_v54 }
 0xe9d   :  { %v2427_v58 = vpop.eup %2426 }
 0xe9e   :  { %767 = vrot.lane.b32.xlu0 %v2427_v58, %s2567_s4 }
 0xf10   :  { %v768_v59 = vpop.permute.xlu0 %767 }
 0xf11   :  { %v2864_v61 = vmul.f32 %v768_v59, %v753_v51 }
 0xf13   :  { %772 = vrot.lane.b32.xlu1 %v2864_v61, %s2568_s17 }
 0xf85   :  { %v2868_v1 = vpop.permute.xlu1 %772 }
 0xf86   :  { %2140 = vmatmul.mubr.msk.f32.vlgmr.msra.gmra.mrb[4].mxu1 %vm187_vm3, %v2868_v1 }
 0xf87   :  { %2290 = vmatpush1.bf16.msra.mxu1 %v2765_v24  ;;  %1064 = vmatprep.mubr.f32.mxu1 %v2566_v9 }
 0xf88   :  { %2292 = vmatprep.subr.bf16.mxu1 %v2767_v25 }
 0xf8b   :  { %2294 = vmatpush1.bf16.msra.mxu1 %v2778_v28 }
0x1059   :  { %v848_v2 = vpop.f32.mrb[4].mxu1 }
0x105a   :  { %v850_v4 = vpop.f32.mrb[5].mxu1 }
0x105b   :  { %v853_v5 = vsel %vm155_vm9, %v848_v2, %v850_v4 }
0x105c   :  { %v854_v6 = vadd.f32 %v853_v5, %v2720_v62 }
0x105e   :  { %v2141_v8 = vmul.f32 -1.442695, %v854_v6 }
0x1060   :  { %2428 = vpow2.f32 %v2141_v8  ;;  %v1112_v8 = vld [vmem:[%s3213_s5 + $0x28] sm:$0xff] }
0x1061   :  { %2430 = vtanh.f32 %v854_v6  ;;  %v1109_v6 = vld [vmem:[%s3213_s5 + $0x10] sm:$0xff] }
0x106a   :  { %v2429_v10 = vpop.eup %2428 }
0x106b   :  { %v858_v11 = vadd.f32 1.0, %v2429_v10  ;;  %v2431_v24 = vpop.eup %2430  ;;  %v1114_v10 = vld [vmem:[%s3213_s5 + $0x38] sm:$0xff] }
0x106d   :  { %2432 = vrcp.f32 %v858_v11 }
0x1077   :  { %v2433_v12 = vpop.eup %2432 }
0x1078   :  { %v862_v25 = vsel %vm2737_vm7, %v2431_v24, %v2433_v12  ;;  %v2299_v12 = vpack.c.bf16 %v1114_v10, %v1112_v8 }
0x1079   :  { %865 = vrot.lane.b32.xlu0 %v862_v25, %s2567_s4  ;;  %v863_v13 = vmul.f32 %v862_v25, %v764_v54 }
0x10eb   :  { %v866_v28 = vpop.permute.xlu0 %865 }
0x10ec   :  { %v868_v60 = vmul.f32 %v866_v28, %v862_v25  ;;  %v1113_v28 = vld [vmem:[%s3213_s5 + $0x30] sm:$0xff] }
0x10ee   :  { %870 = vrot.lane.b32.xlu1 %v868_v60, %s2568_s17 }
0x1160   :  { %v871_v14 = vpop.permute.xlu1 %870 }
0x1161   :  { %v873_v62 = vadd.f32 %v871_v14, %v863_v13 }
0x1163   :  { %2434 = vtanh.f32 %v873_v62 }
0x116d   :  { %v2435_v16 = vpop.eup %2434 }
0x116e   :  { %876 = vrot.lane.b32.xlu0 %v2435_v16, %s2567_s4  ;;  %v1118_v16 = vld [vmem:[%s3213_s5 + $0x58] sm:$0xff] }
0x11e0   :  { %v877_v17 = vpop.permute.xlu0 %876 }
0x11e1   :  { %v2884_v18 = vmul.f32 %v877_v17, %v862_v25  ;;  %v1111_v25 = vld [vmem:[%s3213_s5 + $0x20] sm:$0xff] }
0x11e2   :  { %v2301_v13 = vpack.c.bf16 %v1113_v28, %v1111_v25 }
0x11e3   :  { %881 = vrot.lane.b32.xlu1 %v2884_v18, %s2568_s17 }
0x1255   :  { %v2888_v19 = vpop.permute.xlu1 %881 }
0x1256   :  { %2142 = vmatmul.mubr.msk.f32.vlgmr.msra.gmra.mrb[10].mxu0 %vm187_vm3, %v2888_v19 }
0x1257   :  { %1216 = vmatprep.mubr.f32.mxu0 %v2566_v9 }
0x1329   :  { %v957_v21 = vpop.f32.mrb[10].mxu0 }
0x132a   :  { %v959_v22 = vpop.f32.mrb[11].mxu0 }
0x132b   :  { %v962_v23 = vsel %vm155_vm9, %v957_v21, %v959_v22  ;;  %v1122_v22 = vld [vmem:[%s3213_s5 + $0x78] sm:$0xff] }
0x132c   :  { %v963_v26 = vadd.f32 %v962_v23, %v2723_v63 }
0x132e   :  { %v2143_v27 = vmul.f32 -1.442695, %v963_v26 }
0x1330   :  { %2436 = vpow2.f32 %v2143_v27  ;;  %v1121_v27 = vld [vmem:[%s3213_s5 + $0x70] sm:$0xff] }
0x1331   :  { %2438 = vtanh.f32 %v963_v26  ;;  %v1119_v26 = vld [vmem:[%s3213_s5 + $0x60] sm:$0xff] }
0x133a   :  { %v2437_v29 = vpop.eup %2436 }
0x133b   :  { %v967_v30 = vadd.f32 1.0, %v2437_v29  ;;  %v2439_v20 = vpop.eup %2438  ;;  %v2309_v29 = vpack.c.bf16 %v1121_v27, %v1119_v26 }
0x133d   :  { %2440 = vrcp.f32 %v967_v30 }
0x1347   :  { %v2441_v32 = vpop.eup %2440 }
0x1348   :  { %v971_v33 = vsel %vm2737_vm7, %v2439_v20, %v2441_v32 }
0x1349   :  { %974 = vrot.lane.b32.xlu0 %v971_v33, %s2567_s4  ;;  %v972_v38 = vmul.f32 %v971_v33, %v873_v62  ;;  %v1116_v62 = vld [vmem:[%s3213_s5 + $0x48] sm:$0xff] }
0x134a   :  { %v2303_v17 = vpack.c.bf16 %v1118_v16, %v1116_v62 }
0x13bb   :  { %v975_v36 = vpop.permute.xlu0 %974 }
0x13bc   :  { %v977_v3 = vmul.f32 %v975_v36, %v971_v33 }
0x13be   :  { %979 = vrot.lane.b32.xlu1 %v977_v3, %s2568_s17 }
0x1430   :  { %v980_v39 = vpop.permute.xlu1 %979 }
0x1431   :  { %v982_v63 = vadd.f32 %v980_v39, %v972_v38 }
0x1433   :  { %2442 = vtanh.f32 %v982_v63 }
0x143d   :  { %v2443_v41 = vpop.eup %2442 }
0x143e   :  { %985 = vrot.lane.b32.xlu0 %v2443_v41, %s2567_s4 }
0x14b0   :  { %v986_v42 = vpop.permute.xlu0 %985 }
0x14b1   :  { %v988_v43 = vmul.f32 %v986_v42, %v971_v33 }
0x14b3   :  { %990 = vrot.lane.b32.xlu1 %v988_v43, %s2568_s17 }
0x1525   :  { %v2902_v44 = vpop.permute.xlu1 %990 }
0x1526   :  { %2144 = vmatmul.mubr.msk.f32.vlgmr.msra.gmra.mrb[6].mxu1 %vm187_vm3, %v2902_v44 }
0x1527   :  { %1359 = vmatprep.mubr.f32.mxu1 %v2566_v9 }
0x15f9   :  { %v1066_v45 = vpop.f32.mrb[6].mxu1 }
0x15fa   :  { %v1068_v46 = vpop.f32.mrb[7].mxu1 }
0x15fb   :  { %v1071_v47 = vsel %vm155_vm9, %v1066_v45, %v1068_v46 }
0x15fc   :  { %v1072_v48 = vadd.f32 %v1071_v47, %v2726_v0 }
0x15fe   :  { %v2145_v49 = vmul.f32 -1.442695, %v1072_v48 }
0x1600   :  { %2444 = vpow2.f32 %v2145_v49 }
0x1601   :  { %2446 = vtanh.f32 %v1072_v48 }
0x160a   :  { %v2445_v50 = vpop.eup %2444 }
0x160b   :  { %v1076_v51 = vadd.f32 1.0, %v2445_v50  ;;  %v2447_v52 = vpop.eup %2446 }
0x160d   :  { %2448 = vrcp.f32 %v1076_v51 }
0x1617   :  { %v2449_v55 = vpop.eup %2448 }
0x1618   :  { %v1080_v56 = vsel %vm2737_vm7, %v2447_v52, %v2449_v55 }
0x1619   :  { %1083 = vrot.lane.b32.xlu0 %v1080_v56, %s2567_s4  ;;  %v1081_v0 = vmul.f32 %v1080_v56, %v982_v63  ;;  %v1131_v63 = vld [vmem:[%s3215_s7] sm:$0x3] }
0x161a   :  { %v1138_v41 = vrot.slane %v1131_v63, %v179_v35 }
0x168b   :  { %v1084_v57 = vpop.permute.xlu0 %1083 }
0x168c   :  { %v1086_v54 = vmul.f32 %v1084_v57, %v1080_v56 }
0x168e   :  { %1088 = vrot.lane.b32.xlu1 %v1086_v54, %s2568_s17 }
0x1692   :  { %776 = vrot.lane.b32.xlu1 %v2864_v61, %s2567_s4  ;;  %v1108_v61 = vld [vmem:[%s3213_s5 + $0x8] sm:$0xff] }
0x1696   :  { %994 = vrot.lane.b32.xlu1 %v988_v43, %s2567_s4 }
0x169a   :  { %339 = vrot.lane.b32.xlu1 %v2788_v31, %s2567_s4  ;;  %v1110_v31 = vld [vmem:[%s3213_s5 + $0x18] sm:$0xff] }
0x169b   :  { %v2295_v5 = vpack.c.bf16 %v1110_v31, %v1108_v61 }
0x169d   :  { %2296 = vmatprep.subr.bf16.mxu0 %v2295_v5 }
0x169e   :  { %558 = vrot.lane.b32.xlu1 %v2827_v15, %s2567_s4  ;;  %v1107_v15 = vld [vmem:[%s3213_s5] sm:$0xff] }
0x169f   :  { %v2297_v24 = vpack.c.bf16 %v1109_v6, %v1107_v15 }
0x16a1   :  { %2298 = vmatpush1.bf16.msra.mxu0 %v2297_v24 }
0x16a2   :  { %2300 = vmatprep.subr.bf16.mxu0 %v2299_v12 }
0x16a5   :  { %2302 = vmatpush1.bf16.msra.mxu0 %v2301_v13 }
0x16a6   :  { %2304 = vmatprep.subr.bf16.mxu0 %v2303_v17  ;;  %v1124_v17 = vld [vmem:[%s3214_s6 + $0x8] sm:$0xff] }
0x1700   :  { %v1089_v58 = vpop.permute.xlu1 %1088 }
0x1701   :  { %v1091_v59 = vadd.f32 %v1089_v58, %v1081_v0 }
0x1703   :  { %2450 = vtanh.f32 %v1091_v59 }
0x1704   :  { %v777_v2 = vpop.permute.xlu1 %776 }
0x1705   :  { %779 = vst.msk [vmem:[#allocation2 + $0x4] sm:$0xc] %vm342_vm10, %v777_v2 }
0x1708   :  { %v995_v4 = vpop.permute.xlu1 %994 }
0x1709   :  { %997 = vst.msk [vmem:[#allocation2] sm:$0xc] %vm342_vm10, %v995_v4 }
0x170c   :  { %v340_v11 = vpop.permute.xlu1 %339 }
0x170d   :  { %v2451_v60 = vpop.eup %2450  ;;  %343 = vst.msk [vmem:[#allocation2 + $0xc] sm:$0xc] %vm342_vm10, %v340_v11 }
0x170e   :  { %1094 = vrot.lane.b32.xlu0 %v2451_v60, %s2567_s4 }
0x1710   :  { %v559_v14 = vpop.permute.xlu1 %558 }
0x1711   :  { %561 = vst.msk [vmem:[#allocation2 + $0x8] sm:$0xc] %vm342_vm10, %v559_v14 }
0x1712   :  { %884 = vst.msk [vmem:[#allocation2 + $0xa] sm:$0x3] %vm337_vm8, %v2888_v19  ;;  %885 = vrot.lane.b32.xlu0 %v2884_v18, %s2567_s4  ;;  %v1115_v19 = vld [vmem:[%s3213_s5 + $0x40] sm:$0xff]  ;;  %v1117_v18 = vld [vmem:[%s3213_s5 + $0x50] sm:$0xff] }
0x1713   :  { %v2305_v21 = vpack.c.bf16 %v1117_v18, %v1115_v19  ;;  %v1126_v19 = vld [vmem:[%s3214_s6 + $0x18] sm:$0xff]  ;;  %v1123_v18 = vld [vmem:[%s3214_s6] sm:$0xff] }
0x1715   :  { %2306 = vmatpush1.bf16.msra.mxu0 %v2305_v21  ;;  %v3037_v21 = vpack.c.bf16 %v1126_v19, %v1124_v17 }
0x1716   :  { %449 = vrot.lane.b32.xlu0 %v2808_v53, %s2567_s4  ;;  %v1120_v53 = vld [vmem:[%s3213_s5 + $0x68] sm:$0xff] }
0x1717   :  { %v2307_v23 = vpack.c.bf16 %v1122_v22, %v1120_v53  ;;  %v1125_v53 = vld [vmem:[%s3214_s6 + $0x10] sm:$0xff]  ;;  %v1128_v22 = vld [vmem:[%s3214_s6 + $0x28] sm:$0xff]  ;;  %2312 = vmatprep.subr.bf16.mxu1 %v3037_v21 }
0x1718   :  { %v3048_v26 = vpack.c.bf16 %v1125_v53, %v1123_v18 }
0x1719   :  { %2308 = vmatprep.subr.bf16.mxu0 %v2307_v23  ;;  %v1130_v23 = vld [vmem:[%s3214_s6 + $0x38] sm:$0xff] }
0x171a   :  { %2310 = vmatpush1.bf16.msra.mxu0 %v2309_v29  ;;  %v3050_v27 = vpack.c.bf16 %v1130_v23, %v1128_v22  ;;  %v1127_v29 = vld [vmem:[%s3214_s6 + $0x20] sm:$0xff]  ;;  %2314 = vmatpush1.bf16.msra.mxu1 %v3048_v26 }
0x171b   :  { %2328 = vmatprep.subr.bf16.mxu0 %v3037_v21 }
0x171c   :  { %2316 = vmatprep.subr.bf16.mxu1 %v3050_v27 }
0x1780   :  { %v1095_v30 = vpop.permute.xlu0 %1094 }
0x1781   :  { %v1097_v20 = vmul.f32 %v1095_v30, %v1080_v56  ;;  %v1129_v30 = vld [vmem:[%s3214_s6 + $0x30] sm:$0xff] }
0x1783   :  { %1099 = vrot.lane.b32.xlu1 %v1097_v20, %s2568_s17  ;;  %1103 = vrot.lane.b32.xlu0 %v1097_v20, %s2567_s4  ;;  %v3061_v20 = vpack.c.bf16 %v1129_v30, %v1127_v29 }
0x1784   :  { %v886_v32 = vpop.permute.xlu0 %885 }
0x1785   :  { %888 = vst.msk [vmem:[#allocation2 + $0x2] sm:$0xc] %vm342_vm10, %v886_v32  ;;  %2318 = vmatpush1.bf16.msra.mxu1 %v3061_v20 }
0x1786   :  { %2320 = vmatprep.subr.bf16.mxu1 %v3037_v21 }
0x1787   :  { %667 = vrot.lane.b32.xlu0 %v2846_v40, %s2567_s4 }
0x1788   :  { %v450_v33 = vpop.permute.xlu0 %449 }
0x1789   :  { %452 = vst.msk [vmem:[#allocation2 + $0xa] sm:$0xc] %vm342_vm10, %v450_v33 }
0x178a   :  { %993 = vst.msk [vmem:[#allocation2 + $0xc] sm:$0x3] %vm337_vm8, %v2902_v44 }
0x17f5   :  { %v1100_v36 = vpop.permute.xlu1 %1099  ;;  %v1104_v3 = vpop.permute.xlu0 %1103 }
0x17f6   :  { %1102 = vst.msk [vmem:[#allocation2 + $0xe] sm:$0x3] %vm337_vm8, %v1100_v36 }
0x17f7   :  { %1106 = vst.msk [vmem:[#allocation2 - $0x2] sm:$0xc] %vm342_vm10, %v1104_v3 }
0x17f9   :  { %v668_v38 = vpop.permute.xlu0 %667 }
0x17fa   :  { %670 = vst.msk [vmem:[#allocation2 + $0x6] sm:$0xc] %vm342_vm10, %v668_v38 }
0x17fb   :  { %775 = vst.msk [vmem:[#allocation2 + $0x8] sm:$0x3] %vm337_vm8, %v2868_v1  ;;  %v1142_v1 = vrot.slane %v1131_v63, %v183_v37 }
0x17fe   :  { %v1132_v40 = vld [vmem:[#allocation2] sm:$0xff] }
0x17ff   :  { %2146 = vmatmul.mubr.msk.f32.vlgmr.msra.gmra.mrb[12].mxu0 %vm1145_vm11, %v1132_v40 }
0x1800   :  { %1222 = vmatprep.mubr.f32.mxu0 %v2566_v9  ;;  %2330 = vmatpush1.bf16.msra.mxu0 %v3048_v26 }
0x1801   :  { %2332 = vmatprep.subr.bf16.mxu0 %v3050_v27 }
0x1802   :  { %v1133_v39 = vld [vmem:[#allocation2 + $0x8] sm:$0xff] }
0x1803   :  { %2147 = vmatmul.mubr.msk.f32.gmra.mrb[14].mxu0 %vm1145_vm11, %v1133_v39 }
0x1804   :  { %1565 = vmatprep.mubr.f32.mxu0 %v2566_v9  ;;  %2334 = vmatpush1.bf16.msra.mxu0 %v3061_v20 }
0x1805   :  { %2344 = vmatprep.subr.bf16.mxu0 %v3037_v21 }
0x18d2   :  { %v1218_v42 = vpop.f32.mrb[12].mxu0 }
0x18d3   :  { %v1220_v43 = vpop.f32.mrb[13].mxu0  ;;  %v1219_v44 = vadd.f32 %v1218_v42, %v1138_v41 }
0x18d4   :  { %v1221_v45 = vadd.f32 %v1220_v43, %v1142_v1 }
0x18d5   :  { %v1234_v49 = vrot.slane %v1219_v44, 2  ;;  %v1239_v50 = vrot.slane %v1219_v44, 4  ;;  %v1242_v55 = vrot.slane %v1219_v44, 6 }
0x18d6   :  { %v1224_v46 = vpop.f32.mrb[14].mxu0  ;;  %v1248_v51 = vrot.slane %v1221_v45, 4  ;;  %v1254_v56 = vrot.slane %v1221_v45, 2  ;;  %v1262_v57 = vrot.slane %v1221_v45, 6 }
0x18d7   :  { %v1225_v47 = vadd.f32 %v1224_v46, %v1138_v41  ;;  %v1226_v48 = vpop.f32.mrb[15].mxu0 }
0x18d8   :  { %v1227_v52 = vadd.f32 %v1226_v48, %v1142_v1 }
0x18d9   :  { %v3005_v54 = vsel %vm274_vm4, %v1225_v47, %v1248_v51  ;;  %v1252_v35 = vrot.slane %v1225_v47, 2  ;;  %v1257_v0 = vrot.slane %v1225_v47, 4  ;;  %v1260_v37 = vrot.slane %v1225_v47, 6 }
0x18da   :  { %v1230_v58 = vrot.slane %v1227_v52, 4  ;;  %v1236_v59 = vrot.slane %v1227_v52, 2  ;;  %v3008_v2 = vsel %vm274_vm4, %v1239_v50, %v1227_v52  ;;  %v1244_v4 = vrot.slane %v1227_v52, 6 }
0x18db   :  { %v3011_v61 = vsel %vm274_vm4, %v1252_v35, %v1254_v56  ;;  %v3014_v31 = vsel %vm274_vm4, %v1257_v0, %v1221_v45  ;;  %v3017_v15 = vsel %vm274_vm4, %v1260_v37, %v1262_v57 }
0x18dc   :  { %v1232_v5 = vsel %vm274_vm4, %v1219_v44, %v1230_v58  ;;  %v1238_v6 = vsel %vm274_vm4, %v1234_v49, %v1236_v59  ;;  %v3022_v8 = vsel %vm274_vm4, %v1242_v55, %v1244_v4 }
0x18dd   :  { %v2148_v10 = vmul.f32 -1.442695, %v1232_v5 }
0x18df   :  { %2452 = vpow2.f32 %v2148_v10 }
0x18e0   :  { %2454 = vtanh.f32 %v1232_v5 }
0x18e9   :  { %v2453_v11 = vpop.eup %2452 }
0x18ea   :  { %v1268_v24 = vadd.f32 1.0, %v2453_v11  ;;  %v2455_v12 = vpop.eup %2454 }
0x18ec   :  { %2456 = vrcp.f32 %v1268_v24 }
0x18f6   :  { %v2457_v25 = vpop.eup %2456 }
0x18f7   :  { %v1272_v28 = vsel %vm2737_vm7, %v2455_v12, %v2457_v25 }
0x18f8   :  { %1275 = vrot.lane.b32.xlu0 %v1272_v28, %s2567_s4  ;;  %v1273_v14 = vmul.f32 0.0, %v1272_v28 }
0x196a   :  { %v1276_v60 = vpop.permute.xlu0 %1275 }
0x196b   :  { %v1278_v13 = vmul.f32 %v1276_v60, %v1272_v28 }
0x196d   :  { %1280 = vrot.lane.b32.xlu1 %v1278_v13, %s2568_s17 }
0x19df   :  { %v1281_v62 = vpop.permute.xlu1 %1280 }
0x19e0   :  { %v1283_v16 = vadd.f32 %v1281_v62, %v1273_v14 }
0x19e2   :  { %2458 = vtanh.f32 %v1283_v16 }
0x19ec   :  { %v2459_v32 = vpop.eup %2458 }
0x19ed   :  { %1286 = vrot.lane.b32.xlu0 %v2459_v32, %s2567_s4 }
0x1a5f   :  { %v1287_v33 = vpop.permute.xlu0 %1286 }
0x1a60   :  { %v3071_v36 = vmul.f32 %v1287_v33, %v1272_v28 }
0x1a62   :  { %1291 = vrot.lane.b32.xlu1 %v3071_v36, %s2568_s17 }
0x1ad4   :  { %v1292_v3 = vpop.permute.xlu1 %1291 }
0x1ad5   :  { %2149 = vmatmul.mubr.msk.f32.vlgmr.msra.gmra.mrb[8].mxu1 %vm187_vm3, %v1292_v3 }
0x1ad6   :  { %2322 = vmatpush1.bf16.msra.mxu1 %v3048_v26  ;;  %1462 = vmatprep.mubr.f32.mxu1 %v2566_v9 }
0x1ad7   :  { %2324 = vmatprep.subr.bf16.mxu1 %v3050_v27 }
0x1ada   :  { %2326 = vmatpush1.bf16.msra.mxu1 %v3061_v20 }
0x1adb   :  { %2336 = vmatprep.subr.bf16.mxu1 %v3037_v21 }
0x1ba8   :  { %v1361_v38 = vpop.f32.mrb[8].mxu1 }
0x1ba9   :  { %v1363_v40 = vpop.f32.mrb[9].mxu1 }
0x1baa   :  { %v1366_v39 = vsel %vm155_vm9, %v1361_v38, %v1363_v40 }
0x1bab   :  { %v1367_v63 = vadd.f32 %v1366_v39, %v1238_v6 }
0x1bad   :  { %v2150_v41 = vmul.f32 -1.442695, %v1367_v63 }
0x1baf   :  { %2460 = vpow2.f32 %v2150_v41 }
0x1bb0   :  { %2462 = vtanh.f32 %v1367_v63 }
0x1bb9   :  { %v2461_v1 = vpop.eup %2460 }
0x1bba   :  { %v1371_v42 = vadd.f32 1.0, %v2461_v1  ;;  %v2463_v43 = vpop.eup %2462 }
0x1bbc   :  { %2464 = vrcp.f32 %v1371_v42 }
0x1bc6   :  { %v2465_v44 = vpop.eup %2464 }
0x1bc7   :  { %v1375_v45 = vsel %vm2737_vm7, %v2463_v43, %v2465_v44 }
0x1bc8   :  { %1378 = vrot.lane.b32.xlu0 %v1375_v45, %s2567_s4  ;;  %v1376_v48 = vmul.f32 %v1375_v45, %v1283_v16 }
0x1c3a   :  { %v1379_v46 = vpop.permute.xlu0 %1378 }
0x1c3b   :  { %v1381_v47 = vmul.f32 %v1379_v46, %v1375_v45 }
0x1c3d   :  { %1383 = vrot.lane.b32.xlu1 %v1381_v47, %s2568_s17 }
0x1caf   :  { %v1384_v49 = vpop.permute.xlu1 %1383 }
0x1cb0   :  { %v1386_v50 = vadd.f32 %v1384_v49, %v1376_v48 }
0x1cb2   :  { %2466 = vtanh.f32 %v1386_v50 }
0x1cbc   :  { %v2467_v51 = vpop.eup %2466 }
0x1cbd   :  { %1389 = vrot.lane.b32.xlu0 %v2467_v51, %s2567_s4 }
0x1d2f   :  { %v1390_v52 = vpop.permute.xlu0 %1389 }
0x1d30   :  { %v1392_v55 = vmul.f32 %v1390_v52, %v1375_v45 }
0x1d32   :  { %1394 = vrot.lane.b32.xlu1 %v1392_v55, %s2568_s17 }
0x1da4   :  { %v1395_v56 = vpop.permute.xlu1 %1394 }
0x1da5   :  { %2151 = vmatmul.mubr.msk.f32.vlgmr.msra.gmra.mrb[10].mxu1 %vm187_vm3, %v1395_v56 }
0x1da6   :  { %2338 = vmatpush1.bf16.msra.mxu1 %v3048_v26  ;;  %1668 = vmatprep.mubr.f32.mxu1 %v2566_v9 }
0x1da7   :  { %2340 = vmatprep.subr.bf16.mxu1 %v3050_v27 }
0x1daa   :  { %2342 = vmatpush1.bf16.msra.mxu1 %v3061_v20 }
0x1dab   :  { %2352 = vmatprep.subr.bf16.mxu1 %v3037_v21 }
0x1e78   :  { %v1464_v57 = vpop.f32.mrb[10].mxu1 }
0x1e79   :  { %v1466_v35 = vpop.f32.mrb[11].mxu1 }
0x1e7a   :  { %v1469_v0 = vsel %vm155_vm9, %v1464_v57, %v1466_v35 }
0x1e7b   :  { %v1470_v37 = vadd.f32 %v1469_v0, %v3008_v2 }
0x1e7d   :  { %v2152_v58 = vmul.f32 -1.442695, %v1470_v37 }
0x1e7f   :  { %2468 = vpow2.f32 %v2152_v58 }
0x1e80   :  { %2470 = vtanh.f32 %v1470_v37 }
0x1e89   :  { %v2469_v59 = vpop.eup %2468 }
0x1e8a   :  { %v1474_v4 = vadd.f32 1.0, %v2469_v59  ;;  %v2471_v5 = vpop.eup %2470 }
0x1e8c   :  { %2472 = vrcp.f32 %v1474_v4 }
0x1e96   :  { %v2473_v6 = vpop.eup %2472 }
0x1e97   :  { %v1478_v10 = vsel %vm2737_vm7, %v2471_v5, %v2473_v6 }
0x1e98   :  { %1481 = vrot.lane.b32.xlu0 %v1478_v10, %s2567_s4  ;;  %v1479_v12 = vmul.f32 %v1478_v10, %v1386_v50 }
0x1f0a   :  { %v1482_v11 = vpop.permute.xlu0 %1481 }
0x1f0b   :  { %v1484_v24 = vmul.f32 %v1482_v11, %v1478_v10 }
0x1f0d   :  { %1486 = vrot.lane.b32.xlu1 %v1484_v24, %s2568_s17 }
0x1f7f   :  { %v1487_v25 = vpop.permute.xlu1 %1486 }
0x1f80   :  { %v1489_v2 = vadd.f32 %v1487_v25, %v1479_v12 }
0x1f82   :  { %2474 = vtanh.f32 %v1489_v2 }
0x1f8c   :  { %v2475_v28 = vpop.eup %2474 }
0x1f8d   :  { %1492 = vrot.lane.b32.xlu0 %v2475_v28, %s2567_s4 }
0x1fff   :  { %v1493_v60 = vpop.permute.xlu0 %1492 }
0x2000   :  { %v1495_v13 = vmul.f32 %v1493_v60, %v1478_v10 }
0x2002   :  { %1497 = vrot.lane.b32.xlu1 %v1495_v13, %s2568_s17 }
0x2074   :  { %v1498_v14 = vpop.permute.xlu1 %1497 }
0x2075   :  { %2153 = vmatmul.mubr.msk.f32.vlgmr.msra.gmra.mrb[16].mxu0 %vm187_vm3, %v1498_v14 }
0x2076   :  { %2346 = vmatpush1.bf16.msra.mxu0 %v3048_v26  ;;  %1771 = vmatprep.mubr.f32.mxu0 %v2566_v9 }
0x2077   :  { %2348 = vmatprep.subr.bf16.mxu0 %v3050_v27 }
0x207a   :  { %2350 = vmatpush1.bf16.msra.mxu0 %v3061_v20 }
0x207b   :  { %2360 = vmatprep.subr.bf16.mxu0 %v3037_v21 }
0x2148   :  { %v1567_v62 = vpop.f32.mrb[16].mxu0 }
0x2149   :  { %v1569_v16 = vpop.f32.mrb[17].mxu0 }
0x214a   :  { %v1572_v17 = vsel %vm155_vm9, %v1567_v62, %v1569_v16 }
0x214b   :  { %v1573_v19 = vadd.f32 %v1572_v17, %v3022_v8 }
0x214d   :  { %v2154_v18 = vmul.f32 -1.442695, %v1573_v19 }
0x214f   :  { %2476 = vpow2.f32 %v2154_v18 }
0x2150   :  { %2478 = vtanh.f32 %v1573_v19 }
0x2159   :  { %v2477_v53 = vpop.eup %2476 }
0x215a   :  { %v1577_v22 = vadd.f32 1.0, %v2477_v53  ;;  %v2479_v23 = vpop.eup %2478 }
0x215c   :  { %2480 = vrcp.f32 %v1577_v22 }
0x2166   :  { %v2481_v29 = vpop.eup %2480 }
0x2167   :  { %v1581_v30 = vsel %vm2737_vm7, %v2479_v23, %v2481_v29 }
0x2168   :  { %1584 = vrot.lane.b32.xlu0 %v1581_v30, %s2567_s4  ;;  %v1582_v33 = vmul.f32 %v1581_v30, %v1489_v2 }
0x21da   :  { %v1585_v21 = vpop.permute.xlu0 %1584 }
0x21db   :  { %v1587_v32 = vmul.f32 %v1585_v21, %v1581_v30 }
0x21dd   :  { %1589 = vrot.lane.b32.xlu1 %v1587_v32, %s2568_s17 }
0x224f   :  { %v1590_v3 = vpop.permute.xlu1 %1589 }
0x2250   :  { %v1592_v8 = vadd.f32 %v1590_v3, %v1582_v33 }
0x2252   :  { %2482 = vtanh.f32 %v1592_v8 }
0x225c   :  { %v2483_v38 = vpop.eup %2482 }
0x225d   :  { %1595 = vrot.lane.b32.xlu0 %v2483_v38, %s2567_s4 }
0x22cf   :  { %v1596_v40 = vpop.permute.xlu0 %1595 }
0x22d0   :  { %v1598_v39 = vmul.f32 %v1596_v40, %v1581_v30 }
0x22d2   :  { %1600 = vrot.lane.b32.xlu1 %v1598_v39, %s2568_s17 }
0x2344   :  { %v1601_v63 = vpop.permute.xlu1 %1600 }
0x2345   :  { %2155 = vmatmul.mubr.msk.f32.vlgmr.msra.gmra.mrb[12].mxu1 %vm187_vm3, %v1601_v63 }
0x2346   :  { %2354 = vmatpush1.bf16.msra.mxu1 %v3048_v26  ;;  %1874 = vmatprep.mubr.f32.mxu1 %v2566_v9 }
0x2347   :  { %2356 = vmatprep.subr.bf16.mxu1 %v3050_v27 }
0x234a   :  { %2358 = vmatpush1.bf16.msra.mxu1 %v3061_v20 }
0x2418   :  { %v1670_v41 = vpop.f32.mrb[12].mxu1 }
0x2419   :  { %v1672_v1 = vpop.f32.mrb[13].mxu1 }
0x241a   :  { %v1675_v42 = vsel %vm155_vm9, %v1670_v41, %v1672_v1 }
0x241b   :  { %v1676_v43 = vadd.f32 %v1675_v42, %v3005_v54 }
0x241d   :  { %v2156_v44 = vmul.f32 -1.442695, %v1676_v43 }
0x241f   :  { %2484 = vpow2.f32 %v2156_v44 }
0x2420   :  { %2486 = vtanh.f32 %v1676_v43 }
0x2429   :  { %v2485_v45 = vpop.eup %2484 }
0x242a   :  { %v1680_v46 = vadd.f32 1.0, %v2485_v45  ;;  %v2487_v47 = vpop.eup %2486 }
0x242c   :  { %2488 = vrcp.f32 %v1680_v46 }
0x2436   :  { %v2489_v48 = vpop.eup %2488 }
0x2437   :  { %v1684_v49 = vsel %vm2737_vm7, %v2487_v47, %v2489_v48 }
0x2438   :  { %1687 = vrot.lane.b32.xlu0 %v1684_v49, %s2567_s4  ;;  %v1685_v52 = vmul.f32 %v1684_v49, %v1592_v8 }
0x24aa   :  { %v1688_v50 = vpop.permute.xlu0 %1687 }
0x24ab   :  { %v1690_v51 = vmul.f32 %v1688_v50, %v1684_v49 }
0x24ad   :  { %1692 = vrot.lane.b32.xlu1 %v1690_v51, %s2568_s17  ;;  %v2020_v51 = vld [vmem:[%s3216_s8] sm:$0xff] }
0x251f   :  { %v1693_v55 = vpop.permute.xlu1 %1692 }
0x2520   :  { %v1695_v54 = vadd.f32 %v1693_v55, %v1685_v52  ;;  %v2021_v52 = vld [vmem:[%s3216_s8 + $0x8] sm:$0xff]  ;;  %v2569_v55 = vmov 0.0|0.0  }
0x2521   :  { %2367 = vmatprep.subr.bf16.mxu1 %v2569_v55 }
0x2522   :  { %2490 = vtanh.f32 %v1695_v54 }
0x252c   :  { %v2491_v56 = vpop.eup %2490 }
0x252d   :  { %1698 = vrot.lane.b32.xlu0 %v2491_v56, %s2567_s4  ;;  %v2023_v56 = vld [vmem:[%s3216_s8 + $0x18] sm:$0xff] }
0x259f   :  { %v1699_v57 = vpop.permute.xlu0 %1698 }
0x25a0   :  { %v1701_v35 = vmul.f32 %v1699_v57, %v1684_v49  ;;  %v2371_v57 = vpack.c.bf16 %v2023_v56, %v2022_v7 }
0x25a2   :  { %1703 = vrot.lane.b32.xlu1 %v1701_v35, %s2568_s17  ;;  %v2024_v35 = vld [vmem:[%s3216_s8 + $0x20] sm:$0xff] }
0x2614   :  { %v1704_v0 = vpop.permute.xlu1 %1703 }
0x2615   :  { %2157 = vmatmul.mubr.msk.f32.vlgmr.msra.gmra.mrb[18].mxu0 %vm187_vm3, %v1704_v0  ;;  %v2025_v0 = vld [vmem:[%s3216_s8 + $0x28] sm:$0xff] }
0x2616   :  { %2362 = vmatpush1.bf16.msra.mxu0 %v3048_v26  ;;  %1977 = vmatprep.mubr.f32.mxu0 %v2566_v9 }
0x2617   :  { %2364 = vmatprep.subr.bf16.mxu0 %v3050_v27 }
0x261a   :  { %2366 = vmatpush1.bf16.msra.mxu0 %v3061_v20 }
0x26e8   :  { %v1773_v37 = vpop.f32.mrb[18].mxu0 }
0x26e9   :  { %v1775_v58 = vpop.f32.mrb[19].mxu0 }
0x26ea   :  { %v1778_v59 = vsel %vm155_vm9, %v1773_v37, %v1775_v58  ;;  %v2374_v37 = vpack.c.bf16 %v2025_v0, %v2024_v35  ;;  %v2026_v58 = vld [vmem:[%s3216_s8 + $0x30] sm:$0xff] }
0x26eb   :  { %v1779_v4 = vadd.f32 %v1778_v59, %v3011_v61  ;;  %v2027_v59 = vld [vmem:[%s3216_s8 + $0x38] sm:$0xff]  ;;  %s2571_s8 = smov [#allocation6]  }
0x26ec   :  { %s2116_s22 = sshll.u32 %s2571_s8, 4  ;;  %s2117_s22 = int_to_ptr.vmem [resolvable:$true] %s2116_s22 }
0x26ed   :  { %v2158_v5 = vmul.f32 -1.442695, %v1779_v4  ;;  %p2543_p9 = scmp.lt.s32.totalorder %s2117_s22, %s2117_s22 }
0x26ef   :  { %2492 = vpow2.f32 %v2158_v5  ;;  %v2377_v5 = vpack.c.bf16 %v2027_v59, %v2026_v58 }
0x26f0   :  { %2494 = vtanh.f32 %v1779_v4 }
0x26f9   :  { %v2493_v6 = vpop.eup %2492 }
0x26fa   :  { %v1783_v10 = vadd.f32 1.0, %v2493_v6  ;;  %v2495_v26 = vpop.eup %2494  ;;  %v2015_v6 = vrot.slane %v3071_v36, 2 }
0x26fc   :  { %2496 = vrcp.f32 %v1783_v10 }
0x2706   :  { %v2497_v11 = vpop.eup %2496 }
0x2707   :  { %v1787_v27 = vsel %vm2737_vm7, %v2495_v26, %v2497_v11 }
0x2708   :  { %1790 = vrot.lane.b32.xlu0 %v1787_v27, %s2567_s4  ;;  %v1788_v12 = vmul.f32 %v1787_v27, %v1695_v54  ;;  %v2368_v54 = vpack.c.bf16 %v2021_v52, %v2020_v51 }
0x277a   :  { %v1791_v20 = vpop.permute.xlu0 %1790 }
0x277b   :  { %v1793_v24 = vmul.f32 %v1791_v20, %v1787_v27 }
0x277d   :  { %1795 = vrot.lane.b32.xlu1 %v1793_v24, %s2568_s17  ;;  %v2163_v24 = vld [vmem:[#allocation3] ss:$0 sm:$0xff] }
0x27ef   :  { %v1796_v25 = vpop.permute.xlu1 %1795 }
0x27f0   :  { %v1798_v61 = vadd.f32 %v1796_v25, %v1788_v12 }
0x27f2   :  { %2498 = vtanh.f32 %v1798_v61 }
0x27fc   :  { %v2499_v2 = vpop.eup %2498 }
0x27fd   :  { %1801 = vrot.lane.b32.xlu0 %v2499_v2, %s2567_s4 }
0x286f   :  { %v1802_v28 = vpop.permute.xlu0 %1801 }
0x2870   :  { %v1804_v60 = vmul.f32 %v1802_v28, %v1787_v27 }
0x2872   :  { %1806 = vrot.lane.b32.xlu1 %v1804_v60, %s2568_s17 }
0x28e4   :  { %v1807_v13 = vpop.permute.xlu1 %1806 }
0x28e5   :  { %2159 = vmatmul.mubr.msk.f32.vlgmr.msra.gmra.mrb[14].mxu1 %vm187_vm3, %v1807_v13 }
0x28e6   :  { %2369 = vmatpush3.bf16.msra.mxu1 %v2368_v54  ;;  %2216 = vmatprep.mubr.msk.f32.mxu1 %vm2570_vm12, %v2566_v9 }
0x28e7   :  { %2370 = vmatprep.subr.bf16.mxu1 %v2569_v55 }
0x28ea   :  { %2372 = vmatpush3.bf16.msra.mxu1 %v2371_v57 }
0x28eb   :  { %2373 = vmatprep.subr.bf16.mxu1 %v2569_v55 }
0x28ee   :  { %2375 = vmatpush3.bf16.msra.mxu1 %v2374_v37 }
0x28ef   :  { %2376 = vmatprep.subr.bf16.mxu1 %v2569_v55 }
0x28f2   :  { %2378 = vmatpush3.bf16.msra.mxu1 %v2377_v5 }
0x29b8   :  { %v1876_v14 = vpop.f32.mrb[14].mxu1 }
0x29b9   :  { %v1878_v62 = vpop.f32.mrb[15].mxu1 }
0x29ba   :  { %v1881_v16 = vsel %vm155_vm9, %v1876_v14, %v1878_v62 }
0x29bb   :  { %v1882_v17 = vadd.f32 %v1881_v16, %v3014_v31 }
0x29bd   :  { %v2160_v19 = vmul.f32 -1.442695, %v1882_v17 }
0x29bf   :  { %2500 = vpow2.f32 %v2160_v19 }
0x29c0   :  { %2502 = vtanh.f32 %v1882_v17 }
0x29c9   :  { %v2501_v18 = vpop.eup %2500 }
0x29ca   :  { %v1886_v53 = vadd.f32 1.0, %v2501_v18  ;;  %v2503_v22 = vpop.eup %2502 }
0x29cc   :  { %2504 = vrcp.f32 %v1886_v53 }
0x29d6   :  { %v2505_v23 = vpop.eup %2504 }
0x29d7   :  { %v1890_v29 = vsel %vm2737_vm7, %v2503_v22, %v2505_v23 }
0x29d8   :  { %1893 = vrot.lane.b32.xlu0 %v1890_v29, %s2567_s4  ;;  %v1891_v32 = vmul.f32 %v1890_v29, %v1798_v61 }
0x2a4a   :  { %v1894_v30 = vpop.permute.xlu0 %1893 }
0x2a4b   :  { %v1896_v21 = vmul.f32 %v1894_v30, %v1890_v29 }
0x2a4d   :  { %1898 = vrot.lane.b32.xlu1 %v1896_v21, %s2568_s17 }
0x2abf   :  { %v1899_v33 = vpop.permute.xlu1 %1898 }
0x2ac0   :  { %v1901_v31 = vadd.f32 %v1899_v33, %v1891_v32 }
0x2ac2   :  { %2506 = vtanh.f32 %v1901_v31 }
0x2acc   :  { %v2507_v3 = vpop.eup %2506 }
0x2acd   :  { %1904 = vrot.lane.b32.xlu0 %v2507_v3, %s2567_s4 }
0x2b3f   :  { %v1905_v8 = vpop.permute.xlu0 %1904 }
0x2b40   :  { %v1907_v38 = vmul.f32 %v1905_v8, %v1890_v29 }
0x2b42   :  { %1909 = vrot.lane.b32.xlu1 %v1907_v38, %s2568_s17 }
0x2bb4   :  { %v1910_v40 = vpop.permute.xlu1 %1909 }
0x2bb5   :  { %2161 = vmatmul.mubr.msk.f32.vlgmr.msra.gmra.mrb[20].mxu0 %vm187_vm3, %v1910_v40 }
0x2c88   :  { %v1979_v39 = vpop.f32.mrb[20].mxu0 }
0x2c89   :  { %v1981_v63 = vpop.f32.mrb[21].mxu0 }
0x2c8a   :  { %v1984_v41 = vsel %vm155_vm9, %v1979_v39, %v1981_v63 }
0x2c8b   :  { %v1985_v1 = vadd.f32 %v1984_v41, %v3017_v15 }
0x2c8d   :  { %v2162_v42 = vmul.f32 -1.442695, %v1985_v1 }
0x2c8f   :  { %2508 = vpow2.f32 %v2162_v42 }
0x2c90   :  { %2510 = vtanh.f32 %v1985_v1 }
0x2c99   :  { %v2509_v43 = vpop.eup %2508 }
0x2c9a   :  { %v1989_v44 = vadd.f32 1.0, %v2509_v43  ;;  %v2511_v45 = vpop.eup %2510 }
0x2c9c   :  { %2512 = vrcp.f32 %v1989_v44 }
0x2ca6   :  { %v2513_v46 = vpop.eup %2512 }
0x2ca7   :  { %v1993_v47 = vsel %vm2737_vm7, %v2511_v45, %v2513_v46 }
0x2ca8   :  { %1996 = vrot.lane.b32.xlu0 %v1993_v47, %s2567_s4  ;;  %v1994_v34 = vmul.f32 %v1993_v47, %v1901_v31 }
0x2d1a   :  { %v1997_v48 = vpop.permute.xlu0 %1996 }
0x2d1b   :  { %v1999_v49 = vmul.f32 %v1997_v48, %v1993_v47 }
0x2d1d   :  { %2001 = vrot.lane.b32.xlu1 %v1999_v49, %s2568_s17 }
0x2d8f   :  { %v2002_v50 = vpop.permute.xlu1 %2001 }
0x2d90   :  { %v2004_v15 = vadd.f32 %v2002_v50, %v1994_v34 }
0x2d92   :  { %2514 = vtanh.f32 %v2004_v15 }
0x2d9c   :  { %v2515_v4 = vpop.eup %2514 }
0x2d9d   :  { %2007 = vrot.lane.b32.xlu0 %v2515_v4, %s2567_s4 }
0x2da1   :  { %2016 = vrot.lane.b32.xlu0 %v2015_v6, %s2567_s4  ;;  %s2538_s4 = scalar_lea.vmem %s2117_s22, 32 }
0x2da2   :  { %p2539_p8 = scmp.ne.s32.totalorder %s2117_s22, %s2538_s4  ;;  %p2544_p10 = scmp.lt.s32.totalorder %s2538_s4, %s2538_s4 }
0x2da4   :  { %p2545_p11 = por %p2544_p10, %p2543_p9 }
0x2da6   :  { %p2546_p12 = pnand %p2545_p11, %p2539_p8 }
0x2e0f   :  { %v2008_v10 = vpop.permute.xlu0 %2007 }
0x2e10   :  { %v2010_v26 = vmul.f32 %v2008_v10, %v1993_v47 }
0x2e12   :  { %2012 = vrot.lane.b32.xlu1 %v2010_v26, %s2568_s17 }
0x2e13   :  { %v2017_v11 = vpop.permute.xlu0 %2016 }
0x2e84   :  { %v2013_v27 = vpop.permute.xlu1 %2012 }
0x2e85   :  { %v2019_v20 = vsel %vm187_vm3, %v2013_v27, %v2017_v11 }
0x2e86   :  { %2217 = vmatmul.mubr.msk.f32.vlgmr.msra.gmra.mrb[16].mxu1 %vm1145_vm11, %v2019_v20 }
0x2f59   :  { %v2104_v36 = vpop.f32.mrb[16].mxu1 }
0x2f5a   :  { %v2105_v12 = vadd.f32 %v2163_v24, %v2104_v36  ;;  %v2218_v25 = vpop.f32.mrb[17].mxu1 }
0x2f5c   :  { %2109 = vst.msk [vmem:[#allocation6] sm:$0x3] %vm2108_vm13, %v2105_v12 }
0x2f5d   :  { %2549 = shalt.err (!%p2546_p12)
}
0x2f5e   :  { %s2550_s24 = scalar_lea.hbm %s3218_s10, 32 }
0x2f5f   :  { %p2551_p13 = scmp.ne.s32.totalorder %s3218_s10, %s2550_s24  ;;  %p2554_p0 = scmp.lt.u32.totalorder %s2550_s24, %s3218_s10 }
0x2f61   :  { %p2556_p1 = pnand %p2554_p0, %p2551_p13 }
0x2f63   :  { %2559 = shalt.err (!%p2556_p1)
}
0x2f64   :  { %2119 = dma.vmem_to_hbm [thread:$0]  %s2117_s22, 32, %s3218_s10, [#allocation5]  }
0x2f65   :  { %2562 = dma.done.wait [#allocation5], 32  }
0x2f66   :  { %2563 = vsyncadd [#allocation5], 4294967264 }
0x2f67   :  { %2123 = vsyncpa [#allocation4], 1 }
0x2f68   :  { %2124 = vsyncpa [#allocation5], 1 }

</bundles_post_ra>
